<compile_context>
chip_gen: v6e
topology: v6e:2x2x1
jax: 0.10.0
libtpu: 0.0.40
codegen_flags: <defaults>
</compile_context>

<pallas_src>
import math
import numpy as np
import jax
import jax.numpy as jnp
from jax.experimental import pallas as pl
from jax.experimental.pallas import tpu as pltpu


# ----------------------------- model constants ------------------------------
N_B, N_A, N_NBH = 2, 8, 7                 # batch, atoms, neighbors (= N_A - 1)
N_ATOM_BASIS = 32                         # n_atom_basis
N_FILTERS = 32                            # n_filters
N_GAUSSIANS = 25                          # n_gaussians
G_PAD = 32                                # gaussians padded to 32 (exact: pads are 0)
N_INTERACTIONS = 3
MAX_Z = 100
CUTOFF = 5.0

BN = N_B * N_A                            # batch-folded atoms   (16)
BP = N_B * N_A * N_NBH                    # batch-folded pairs   (112)
F3 = N_INTERACTIONS * N_FILTERS           # lane-concatenated filter width (96)
LN2 = float(np.log(2.0))

GS_WIDTH = CUTOFF / (N_GAUSSIANS - 1)
GS_COEFF = -0.5 / (GS_WIDTH * GS_WIDTH)
PI_OVER_CUTOFF = float(math.pi / CUTOFF)


def _ssp(t):
    # shifted_softplus(x) = softplus(x) - log(2), numerically stable form (f32)
    return jnp.log(1.0 + jnp.exp(-jnp.abs(t))) + jnp.maximum(t, 0.0) - LN2


# ----------------------- fused SchNet kernel (1 call) ------------------------
def _schnet_fused_kernel(x_ref, fg_ref, selcm_ref, wfilt_ref, wstk_ref, b_ref,
                         o_ref, wflt_scr):
    # ---------- prologue: layer-batched (lane-concatenated) filter network ----
    f_ij = fg_ref[:, :G_PAD]                 # (BP, 32)  bf16 Gaussian-smeared dists
    gat = fg_ref[:, G_PAD:]                  # (BP, BN)  bf16 neighbor-gather one-hot

    w1cat = wfilt_ref[:G_PAD, :]             # (32, 96)  bf16 lane-concat of 3x w1
    w2blk = wfilt_ref[G_PAD:, :]             # (96, 96)  bf16 block-diag of 3x w2
    b1cat = b_ref[0:1, :]                    # (1, 96)   f32
    b2cat = b_ref[1:2, :]                    # (1, 96)   f32

    h = jnp.dot(f_ij, w1cat, preferred_element_type=jnp.float32) + b1cat   # (BP, 96)
    h = _ssp(h)
    wflt = jnp.dot(h.astype(jnp.bfloat16), w2blk,
                   preferred_element_type=jnp.float32) + b2cat             # (BP, 96)
    # stash per-layer filter slices at lane offset 0 (cutoff*mask already folded
    # into the selector, so no per-pair scalar multiply is needed here)
    for l in range(N_INTERACTIONS):
        wflt_scr[l] = wflt[:, l * N_FILTERS:(l + 1) * N_FILTERS]           # (BP, 32)

    selcm = selcm_ref[...]                   # (BN, BP) bf16 selector * cutoff * mask
    x = x_ref[...]                           # (BN, F)  f32, stays resident

    # ---------- stacked interaction blocks (static unroll) --------------------
    for l in range(N_INTERACTIONS):
        win = wstk_ref[3 * l + 0]            # (F, Ff) bf16, in2f (no bias)
        wout = wstk_ref[3 * l + 1]           # (Ff, F) bf16, f2out
        wd = wstk_ref[3 * l + 2]             # (F, F)  bf16, interaction.dense
        bout = b_ref[2 + l:3 + l, :N_ATOM_BASIS]   # (1, F) f32
        bd = b_ref[5 + l:6 + l, :N_ATOM_BASIS]     # (1, F) f32

        # CFConv: in2f, neighbor gather, per-pair filter, masked neighbor-sum
        y = jnp.dot(x.astype(jnp.bfloat16), win,
                    preferred_element_type=jnp.float32)                    # (BN, Ff)
        y_nbh = jnp.dot(gat, y.astype(jnp.bfloat16),
                        preferred_element_type=jnp.float32)                # (BP, Ff)
        y_nbh = y_nbh * wflt_scr[l]
        agg = jnp.dot(selcm, y_nbh.astype(jnp.bfloat16),
                      preferred_element_type=jnp.float32)                  # (BN, Ff)

        # f2out: Dense(Ff->F, bias, ssp)
        z = _ssp(jnp.dot(agg.astype(jnp.bfloat16), wout,
                         preferred_element_type=jnp.float32) + bout)
        # interaction.dense: Dense(F->F, bias, no activation), then residual
        v = jnp.dot(z.astype(jnp.bfloat16), wd,
                    preferred_element_type=jnp.float32) + bd
        x = x + v

    # TODO(synk): output last-dim is 32 (<128 lanes) -> masked store; written once
    # (~2 KB), lane-dense repack skipped as negligible.
    o_ref[...] = x


def schnet_pallas(x0, fg, sel_cm, wfilt, wstk, bias):
    # grid-free call: every operand is a single whole-array VMEM block.
    return pl.pallas_call(
        _schnet_fused_kernel,
        out_shape=jax.ShapeDtypeStruct((BN, N_ATOM_BASIS), jnp.float32),
        scratch_shapes=[pltpu.VMEM((N_INTERACTIONS, BP, N_FILTERS), jnp.float32)],
    )(x0, fg, sel_cm, wfilt, wstk, bias)


# ------------------------- structural constants (topology) -------------------
def prepare_structure(neighbors):
    """One-hot gather / segment-sum selectors; depend only on neighbor topology."""
    n_b, n_a, n_nbh = neighbors.shape
    idx_b = jnp.arange(n_b, dtype=jnp.int32)[:, None, None]
    glob_nbr = (neighbors.astype(jnp.int32) + idx_b * n_a).reshape(-1)          # (BP,)
    gat = (glob_nbr[:, None] == jnp.arange(n_b * n_a)[None, :]).astype(jnp.bfloat16)  # (BP, BN)
    center = jnp.arange(n_b * n_a * n_nbh) // n_nbh
    sel = (jnp.arange(n_b * n_a)[:, None] == center[None, :]).astype(jnp.float32)     # (BN, BP)
    return gat, sel


# ------------------------------- full forward --------------------------------
@jax.jit
def schnet_forward(params, atomic_numbers, positions, neighbors, neighbor_mask,
                   gat, sel):
    n_b, n_a = atomic_numbers.shape

    # embedding lookup (padding_idx=0 row is zero) -- glue (gather)
    x = params["embedding"][atomic_numbers]                        # (N_b, N_a, F)
    x0 = x.reshape(n_b * n_a, N_ATOM_BASIS).astype(jnp.float32)    # batch-folded

    # AtomDistances (no PBC): gather neighbor positions, L2 norm, mask -- glue
    idx_b = jnp.arange(n_b)[:, None, None]
    pos_nbh = positions[idx_b, neighbors]                          # (N_b, N_a, N_nbh, 3)
    dvec = pos_nbh - positions[:, :, None, :]
    r_ij = jnp.sqrt(jnp.sum(dvec * dvec, axis=-1))
    mask = (neighbor_mask != 0).astype(jnp.float32)
    r_ij = r_ij * mask
    r = r_ij.reshape(-1)                                           # (BP,)
    m = mask.reshape(-1)                                           # (BP,)

    # Gaussian smearing, padded 25 -> 32 (padded columns are zero -> exact)
    offsets = jnp.arange(N_GAUSSIANS, dtype=jnp.float32) * GS_WIDTH
    diff = r[:, None] - offsets[None, :]
    f_ij = jnp.exp(GS_COEFF * diff * diff)                         # (BP, 25)
    f_ij = jnp.pad(f_ij, ((0, 0), (0, G_PAD - N_GAUSSIANS)))       # (BP, 32)

    # cosine cutoff * neighbor mask, folded into the segment-sum selector
    c = 0.5 * (jnp.cos(r * PI_OVER_CUTOFF) + 1.0) * (r < CUTOFF).astype(jnp.float32)
    cm = c * m                                                     # (BP,)
    sel_cm = (sel * cm[None, :]).astype(jnp.bfloat16)              # (BN, BP)

    # pack [f_ij | gat] into one bf16 structural slab
    fg = jnp.concatenate([f_ij.astype(jnp.bfloat16), gat], axis=-1)  # (BP, 48)

    out = schnet_pallas(x0, fg, sel_cm, params["wfilt"], params["wstk"],
                        params["bias"])                            # (BN, F)
    return out.reshape(n_b, n_a, N_ATOM_BASIS)


# ------------------------------ parameter setup -------------------------------
def init_params(key):
    ks = jax.random.split(key, 1 + N_INTERACTIONS)
    emb = 0.1 * jax.random.normal(ks[0], (MAX_Z, N_ATOM_BASIS), jnp.float32)
    emb = emb.at[0].set(0.0)  # padding_idx=0

    def xavier(k, shape):
        fan_in, fan_out = shape
        lim = math.sqrt(6.0 / (fan_in + fan_out))
        return jax.random.uniform(k, shape, jnp.float32, -lim, lim)

    # packed filter-network weights: w1 lane-concat (padded G) + w2 block-diag
    w1cat = jnp.zeros((G_PAD, F3), jnp.float32)
    w2blk = jnp.zeros((F3, F3), jnp.float32)
    wstk_list = []
    # bias slab rows: 0=b1cat, 1=b2cat, 2..4=bout_l (lanes 0:32), 5..7=bd_l (lanes 0:32)
    bias = jnp.zeros((8, F3), jnp.float32)   # schnetpack Dense default: zero biases

    for l in range(N_INTERACTIONS):
        lk = jax.random.split(ks[1 + l], 5)
        w1 = xavier(lk[0], (N_GAUSSIANS, N_FILTERS))
        w2 = xavier(lk[1], (N_FILTERS, N_FILTERS))
        win = xavier(lk[2], (N_ATOM_BASIS, N_FILTERS))   # in2f, no bias
        wout = xavier(lk[3], (N_FILTERS, N_ATOM_BASIS))  # f2out
        wd = xavier(lk[4], (N_ATOM_BASIS, N_ATOM_BASIS))  # interaction.dense
        w1cat = w1cat.at[:N_GAUSSIANS, l * N_FILTERS:(l + 1) * N_FILTERS].set(w1)
        w2blk = w2blk.at[l * N_FILTERS:(l + 1) * N_FILTERS,
                         l * N_FILTERS:(l + 1) * N_FILTERS].set(w2)
        wstk_list.extend([win, wout, wd])

    wfilt = jnp.concatenate([w1cat, w2blk], axis=0).astype(jnp.bfloat16)   # (128, 96)
    wstk = jnp.stack(wstk_list).astype(jnp.bfloat16)                        # (9, 32, 32)

    return dict(embedding=emb, wfilt=wfilt, wstk=wstk, bias=bias)


# ------------------------------------ main ------------------------------------
if __name__ == "__main__":
    key = jax.random.PRNGKey(0)
    k_par, k_z, k_pos = jax.random.split(key, 3)

    params = init_params(k_par)

    atomic_numbers = jax.random.randint(k_z, (N_B, N_A), 1, MAX_Z, dtype=jnp.int32)
    positions = 2.0 * jax.random.normal(k_pos, (N_B, N_A, 3), jnp.float32)

    # neighbors: for each atom, the indices of all other atoms
    idx = np.arange(N_A)
    nbr_single = np.stack([np.concatenate([idx[:i], idx[i + 1:]]) for i in range(N_A)],
                          axis=0)
    neighbors = jnp.asarray(np.broadcast_to(nbr_single[None], (N_B, N_A, N_NBH)).copy(),
                            dtype=jnp.int32)
    neighbor_mask = jnp.ones((N_B, N_A, N_NBH), jnp.float32)
    # exercise the padding-mask path on a couple of entries
    neighbor_mask = neighbor_mask.at[1, N_A - 1, N_NBH - 2:].set(0.0)

    # topology-only structural one-hots, computed once (not per call)
    gat, sel = prepare_structure(neighbors)

    out = schnet_forward(params, atomic_numbers, positions, neighbors, neighbor_mask,
                         gat, sel)
    out = jax.block_until_ready(out)

    assert out.shape == (N_B, N_A, N_ATOM_BASIS), out.shape
    assert bool(jnp.all(jnp.isfinite(out)))
    print("KERNEL_OK")
</pallas_src>

<mosaic_0001>
module attributes {stable_mosaic.version = 11 : i64} {
  func.func @_schnet_fused_kernel(%arg0: memref<16x32xf32, #tpu.memory_space<vmem>>, %arg1: memref<112x48xbf16, #tpu.memory_space<vmem>>, %arg2: memref<16x112xbf16, #tpu.memory_space<vmem>>, %arg3: memref<128x96xbf16, #tpu.memory_space<vmem>>, %arg4: memref<9x32x32xbf16, #tpu.memory_space<vmem>>, %arg5: memref<8x96xf32, #tpu.memory_space<vmem>>, %arg6: memref<16x32xf32, #tpu.memory_space<vmem>>, %arg7: memref<3x112x32xf32, #tpu.memory_space<vmem>>) attributes {dimension_semantics = [], scalar_prefetch = 0 : i64, scratch_operands = 1 : i64, tpu.core_type = #tpu.core_type<tc>} {
    %c0 = arith.constant 0 : index
    %c0_0 = arith.constant 0 : index
    %0 = vector.load %arg1[%c0, %c0_0] : memref<112x48xbf16, #tpu.memory_space<vmem>>, vector<112x32xbf16>
    %c0_1 = arith.constant 0 : index
    %c32 = arith.constant 32 : index
    %1 = vector.load %arg1[%c0_1, %c32] : memref<112x48xbf16, #tpu.memory_space<vmem>>, vector<112x16xbf16>
    %c0_2 = arith.constant 0 : index
    %c0_3 = arith.constant 0 : index
    %2 = vector.load %arg3[%c0_2, %c0_3] : memref<128x96xbf16, #tpu.memory_space<vmem>>, vector<32x96xbf16>
    %c32_4 = arith.constant 32 : index
    %c0_5 = arith.constant 0 : index
    %3 = vector.load %arg3[%c32_4, %c0_5] : memref<128x96xbf16, #tpu.memory_space<vmem>>, vector<96x96xbf16>
    %c0_6 = arith.constant 0 : index
    %c0_7 = arith.constant 0 : index
    %4 = vector.load %arg5[%c0_6, %c0_7] : memref<8x96xf32, #tpu.memory_space<vmem>>, vector<1x96xf32>
    %c1 = arith.constant 1 : index
    %c0_8 = arith.constant 0 : index
    %5 = vector.load %arg5[%c1, %c0_8] : memref<8x96xf32, #tpu.memory_space<vmem>>, vector<1x96xf32>
    %cst = arith.constant dense<0.000000e+00> : vector<112x96xf32>
    %6 = tpu.matmul %0, %2, %cst {dimension_numbers = #tpu.dot_dimension_numbers<[1], [0], [0], [1], [0, 0, 1, 1], [], []>} : vector<112x32xbf16>, vector<32x96xbf16>, vector<112x96xf32> -> vector<112x96xf32>
    %7 = vector.broadcast %4 : vector<1x96xf32> to vector<112x96xf32>
    %8 = arith.addf %6, %7 : vector<112x96xf32>
    %9 = math.absf %8 : vector<112x96xf32>
    %cst_9 = arith.constant 0.000000e+00 : f32
    %10 = vector.broadcast %cst_9 : f32 to vector<112x96xf32>
    %11 = arith.subf %10, %9 : vector<112x96xf32>
    %12 = math.exp %11 : vector<112x96xf32>
    %cst_10 = arith.constant 1.000000e+00 : f32
    %13 = vector.broadcast %cst_10 : f32 to vector<112x96xf32>
    %14 = arith.addf %13, %12 : vector<112x96xf32>
    %15 = math.log %14 : vector<112x96xf32>
    %cst_11 = arith.constant 0.000000e+00 : f32
    %16 = vector.broadcast %cst_11 : f32 to vector<112x96xf32>
    %17 = arith.maximumf %8, %16 : vector<112x96xf32>
    %18 = arith.addf %15, %17 : vector<112x96xf32>
    %cst_12 = arith.constant 0.693147182 : f32
    %19 = vector.broadcast %cst_12 : f32 to vector<112x96xf32>
    %20 = arith.subf %18, %19 : vector<112x96xf32>
    %21 = arith.truncf %20 : vector<112x96xf32> to vector<112x96xbf16>
    %cst_13 = arith.constant dense<0.000000e+00> : vector<112x96xf32>
    %22 = tpu.matmul %21, %3, %cst_13 {dimension_numbers = #tpu.dot_dimension_numbers<[1], [0], [0], [1], [0, 0, 1, 1], [], []>} : vector<112x96xbf16>, vector<96x96xbf16>, vector<112x96xf32> -> vector<112x96xf32>
    %23 = vector.broadcast %5 : vector<1x96xf32> to vector<112x96xf32>
    %24 = arith.addf %22, %23 : vector<112x96xf32>
    %25 = vector.extract_strided_slice %24 {offsets = [0, 0], sizes = [112, 32], strides = [1, 1]} : vector<112x96xf32> to vector<112x32xf32>
    %c0_14 = arith.constant 0 : index
    %c0_15 = arith.constant 0 : index
    %c0_16 = arith.constant 0 : index
    %26 = vector.load %arg7[%c0_14, %c0_15, %c0_16] : memref<3x112x32xf32, #tpu.memory_space<vmem>>, vector<1x112x32xf32>
    %27 = vector.shape_cast %26 : vector<1x112x32xf32> to vector<112x32xf32>
    %28 = vector.shape_cast %25 : vector<112x32xf32> to vector<1x112x32xf32>
    tpu.vector_store %arg7[%c0_14, %c0_15, %c0_16], %28 {strides = array<i32>} : memref<3x112x32xf32, #tpu.memory_space<vmem>>, vector<1x112x32xf32>,
    %29 = vector.extract_strided_slice %24 {offsets = [0, 32], sizes = [112, 32], strides = [1, 1]} : vector<112x96xf32> to vector<112x32xf32>
    %c1_17 = arith.constant 1 : index
    %c0_18 = arith.constant 0 : index
    %c0_19 = arith.constant 0 : index
    %30 = vector.load %arg7[%c1_17, %c0_18, %c0_19] : memref<3x112x32xf32, #tpu.memory_space<vmem>>, vector<1x112x32xf32>
    %31 = vector.shape_cast %30 : vector<1x112x32xf32> to vector<112x32xf32>
    %32 = vector.shape_cast %29 : vector<112x32xf32> to vector<1x112x32xf32>
    tpu.vector_store %arg7[%c1_17, %c0_18, %c0_19], %32 {strides = array<i32>} : memref<3x112x32xf32, #tpu.memory_space<vmem>>, vector<1x112x32xf32>,
    %33 = vector.extract_strided_slice %24 {offsets = [0, 64], sizes = [112, 32], strides = [1, 1]} : vector<112x96xf32> to vector<112x32xf32>
    %c2 = arith.constant 2 : index
    %c0_20 = arith.constant 0 : index
    %c0_21 = arith.constant 0 : index
    %34 = vector.load %arg7[%c2, %c0_20, %c0_21] : memref<3x112x32xf32, #tpu.memory_space<vmem>>, vector<1x112x32xf32>
    %35 = vector.shape_cast %34 : vector<1x112x32xf32> to vector<112x32xf32>
    %36 = vector.shape_cast %33 : vector<112x32xf32> to vector<1x112x32xf32>
    tpu.vector_store %arg7[%c2, %c0_20, %c0_21], %36 {strides = array<i32>} : memref<3x112x32xf32, #tpu.memory_space<vmem>>, vector<1x112x32xf32>,
    %c0_22 = arith.constant 0 : index
    %c0_23 = arith.constant 0 : index
    %37 = vector.load %arg2[%c0_22, %c0_23] : memref<16x112xbf16, #tpu.memory_space<vmem>>, vector<16x112xbf16>
    %c0_24 = arith.constant 0 : index
    %c0_25 = arith.constant 0 : index
    %38 = vector.load %arg0[%c0_24, %c0_25] : memref<16x32xf32, #tpu.memory_space<vmem>>, vector<16x32xf32>
    %c0_26 = arith.constant 0 : index
    %c0_27 = arith.constant 0 : index
    %c0_28 = arith.constant 0 : index
    %39 = vector.load %arg4[%c0_26, %c0_27, %c0_28] : memref<9x32x32xbf16, #tpu.memory_space<vmem>>, vector<1x32x32xbf16>
    %40 = vector.shape_cast %39 : vector<1x32x32xbf16> to vector<32x32xbf16>
    %c1_29 = arith.constant 1 : index
    %c0_30 = arith.constant 0 : index
    %c0_31 = arith.constant 0 : index
    %41 = vector.load %arg4[%c1_29, %c0_30, %c0_31] : memref<9x32x32xbf16, #tpu.memory_space<vmem>>, vector<1x32x32xbf16>
    %42 = vector.shape_cast %41 : vector<1x32x32xbf16> to vector<32x32xbf16>
    %c2_32 = arith.constant 2 : index
    %c0_33 = arith.constant 0 : index
    %c0_34 = arith.constant 0 : index
    %43 = vector.load %arg4[%c2_32, %c0_33, %c0_34] : memref<9x32x32xbf16, #tpu.memory_space<vmem>>, vector<1x32x32xbf16>
    %44 = vector.shape_cast %43 : vector<1x32x32xbf16> to vector<32x32xbf16>
    %c2_35 = arith.constant 2 : index
    %c0_36 = arith.constant 0 : index
    %45 = vector.load %arg5[%c2_35, %c0_36] : memref<8x96xf32, #tpu.memory_space<vmem>>, vector<1x32xf32>
    %c5 = arith.constant 5 : index
    %c0_37 = arith.constant 0 : index
    %46 = vector.load %arg5[%c5, %c0_37] : memref<8x96xf32, #tpu.memory_space<vmem>>, vector<1x32xf32>
    %47 = arith.truncf %38 : vector<16x32xf32> to vector<16x32xbf16>
    %cst_38 = arith.constant dense<0.000000e+00> : vector<16x32xf32>
    %48 = tpu.matmul %47, %40, %cst_38 {dimension_numbers = #tpu.dot_dimension_numbers<[1], [0], [0], [1], [0, 0, 1, 1], [], []>} : vector<16x32xbf16>, vector<32x32xbf16>, vector<16x32xf32> -> vector<16x32xf32>
    %49 = arith.truncf %48 : vector<16x32xf32> to vector<16x32xbf16>
    %cst_39 = arith.constant dense<0.000000e+00> : vector<112x32xf32>
    %50 = tpu.matmul %1, %49, %cst_39 {dimension_numbers = #tpu.dot_dimension_numbers<[1], [0], [0], [1], [0, 0, 1, 1], [], []>} : vector<112x16xbf16>, vector<16x32xbf16>, vector<112x32xf32> -> vector<112x32xf32>
    %c0_40 = arith.constant 0 : index
    %c0_41 = arith.constant 0 : index
    %c0_42 = arith.constant 0 : index
    %51 = vector.load %arg7[%c0_40, %c0_41, %c0_42] : memref<3x112x32xf32, #tpu.memory_space<vmem>>, vector<1x112x32xf32>
    %52 = vector.shape_cast %51 : vector<1x112x32xf32> to vector<112x32xf32>
    %53 = arith.mulf %50, %52 : vector<112x32xf32>
    %54 = arith.truncf %53 : vector<112x32xf32> to vector<112x32xbf16>
    %cst_43 = arith.constant dense<0.000000e+00> : vector<16x32xf32>
    %55 = tpu.matmul %37, %54, %cst_43 {dimension_numbers = #tpu.dot_dimension_numbers<[1], [0], [0], [1], [0, 0, 1, 1], [], []>} : vector<16x112xbf16>, vector<112x32xbf16>, vector<16x32xf32> -> vector<16x32xf32>
    %56 = arith.truncf %55 : vector<16x32xf32> to vector<16x32xbf16>
    %cst_44 = arith.constant dense<0.000000e+00> : vector<16x32xf32>
    %57 = tpu.matmul %56, %42, %cst_44 {dimension_numbers = #tpu.dot_dimension_numbers<[1], [0], [0], [1], [0, 0, 1, 1], [], []>} : vector<16x32xbf16>, vector<32x32xbf16>, vector<16x32xf32> -> vector<16x32xf32>
    %58 = vector.broadcast %45 : vector<1x32xf32> to vector<16x32xf32>
    %59 = arith.addf %57, %58 : vector<16x32xf32>
    %60 = math.absf %59 : vector<16x32xf32>
    %cst_45 = arith.constant 0.000000e+00 : f32
    %61 = vector.broadcast %cst_45 : f32 to vector<16x32xf32>
    %62 = arith.subf %61, %60 : vector<16x32xf32>
    %63 = math.exp %62 : vector<16x32xf32>
    %cst_46 = arith.constant 1.000000e+00 : f32
    %64 = vector.broadcast %cst_46 : f32 to vector<16x32xf32>
    %65 = arith.addf %64, %63 : vector<16x32xf32>
    %66 = math.log %65 : vector<16x32xf32>
    %cst_47 = arith.constant 0.000000e+00 : f32
    %67 = vector.broadcast %cst_47 : f32 to vector<16x32xf32>
    %68 = arith.maximumf %59, %67 : vector<16x32xf32>
    %69 = arith.addf %66, %68 : vector<16x32xf32>
    %cst_48 = arith.constant 0.693147182 : f32
    %70 = vector.broadcast %cst_48 : f32 to vector<16x32xf32>
    %71 = arith.subf %69, %70 : vector<16x32xf32>
    %72 = arith.truncf %71 : vector<16x32xf32> to vector<16x32xbf16>
    %cst_49 = arith.constant dense<0.000000e+00> : vector<16x32xf32>
    %73 = tpu.matmul %72, %44, %cst_49 {dimension_numbers = #tpu.dot_dimension_numbers<[1], [0], [0], [1], [0, 0, 1, 1], [], []>} : vector<16x32xbf16>, vector<32x32xbf16>, vector<16x32xf32> -> vector<16x32xf32>
    %74 = vector.broadcast %46 : vector<1x32xf32> to vector<16x32xf32>
    %75 = arith.addf %73, %74 : vector<16x32xf32>
    %76 = arith.addf %38, %75 : vector<16x32xf32>
    %c3 = arith.constant 3 : index
    %c0_50 = arith.constant 0 : index
    %c0_51 = arith.constant 0 : index
    %77 = vector.load %arg4[%c3, %c0_50, %c0_51] : memref<9x32x32xbf16, #tpu.memory_space<vmem>>, vector<1x32x32xbf16>
    %78 = vector.shape_cast %77 : vector<1x32x32xbf16> to vector<32x32xbf16>
    %c4 = arith.constant 4 : index
    %c0_52 = arith.constant 0 : index
    %c0_53 = arith.constant 0 : index
    %79 = vector.load %arg4[%c4, %c0_52, %c0_53] : memref<9x32x32xbf16, #tpu.memory_space<vmem>>, vector<1x32x32xbf16>
    %80 = vector.shape_cast %79 : vector<1x32x32xbf16> to vector<32x32xbf16>
    %c5_54 = arith.constant 5 : index
    %c0_55 = arith.constant 0 : index
    %c0_56 = arith.constant 0 : index
    %81 = vector.load %arg4[%c5_54, %c0_55, %c0_56] : memref<9x32x32xbf16, #tpu.memory_space<vmem>>, vector<1x32x32xbf16>
    %82 = vector.shape_cast %81 : vector<1x32x32xbf16> to vector<32x32xbf16>
    %c3_57 = arith.constant 3 : index
    %c0_58 = arith.constant 0 : index
    %83 = vector.load %arg5[%c3_57, %c0_58] : memref<8x96xf32, #tpu.memory_space<vmem>>, vector<1x32xf32>
    %c6 = arith.constant 6 : index
    %c0_59 = arith.constant 0 : index
    %84 = vector.load %arg5[%c6, %c0_59] : memref<8x96xf32, #tpu.memory_space<vmem>>, vector<1x32xf32>
    %85 = arith.truncf %76 : vector<16x32xf32> to vector<16x32xbf16>
    %cst_60 = arith.constant dense<0.000000e+00> : vector<16x32xf32>
    %86 = tpu.matmul %85, %78, %cst_60 {dimension_numbers = #tpu.dot_dimension_numbers<[1], [0], [0], [1], [0, 0, 1, 1], [], []>} : vector<16x32xbf16>, vector<32x32xbf16>, vector<16x32xf32> -> vector<16x32xf32>
    %87 = arith.truncf %86 : vector<16x32xf32> to vector<16x32xbf16>
    %cst_61 = arith.constant dense<0.000000e+00> : vector<112x32xf32>
    %88 = tpu.matmul %1, %87, %cst_61 {dimension_numbers = #tpu.dot_dimension_numbers<[1], [0], [0], [1], [0, 0, 1, 1], [], []>} : vector<112x16xbf16>, vector<16x32xbf16>, vector<112x32xf32> -> vector<112x32xf32>
    %c1_62 = arith.constant 1 : index
    %c0_63 = arith.constant 0 : index
    %c0_64 = arith.constant 0 : index
    %89 = vector.load %arg7[%c1_62, %c0_63, %c0_64] : memref<3x112x32xf32, #tpu.memory_space<vmem>>, vector<1x112x32xf32>
    %90 = vector.shape_cast %89 : vector<1x112x32xf32> to vector<112x32xf32>
    %91 = arith.mulf %88, %90 : vector<112x32xf32>
    %92 = arith.truncf %91 : vector<112x32xf32> to vector<112x32xbf16>
    %cst_65 = arith.constant dense<0.000000e+00> : vector<16x32xf32>
    %93 = tpu.matmul %37, %92, %cst_65 {dimension_numbers = #tpu.dot_dimension_numbers<[1], [0], [0], [1], [0, 0, 1, 1], [], []>} : vector<16x112xbf16>, vector<112x32xbf16>, vector<16x32xf32> -> vector<16x32xf32>
    %94 = arith.truncf %93 : vector<16x32xf32> to vector<16x32xbf16>
    %cst_66 = arith.constant dense<0.000000e+00> : vector<16x32xf32>
    %95 = tpu.matmul %94, %80, %cst_66 {dimension_numbers = #tpu.dot_dimension_numbers<[1], [0], [0], [1], [0, 0, 1, 1], [], []>} : vector<16x32xbf16>, vector<32x32xbf16>, vector<16x32xf32> -> vector<16x32xf32>
    %96 = vector.broadcast %83 : vector<1x32xf32> to vector<16x32xf32>
    %97 = arith.addf %95, %96 : vector<16x32xf32>
    %98 = math.absf %97 : vector<16x32xf32>
    %cst_67 = arith.constant 0.000000e+00 : f32
    %99 = vector.broadcast %cst_67 : f32 to vector<16x32xf32>
    %100 = arith.subf %99, %98 : vector<16x32xf32>
    %101 = math.exp %100 : vector<16x32xf32>
    %cst_68 = arith.constant 1.000000e+00 : f32
    %102 = vector.broadcast %cst_68 : f32 to vector<16x32xf32>
    %103 = arith.addf %102, %101 : vector<16x32xf32>
    %104 = math.log %103 : vector<16x32xf32>
    %cst_69 = arith.constant 0.000000e+00 : f32
    %105 = vector.broadcast %cst_69 : f32 to vector<16x32xf32>
    %106 = arith.maximumf %97, %105 : vector<16x32xf32>
    %107 = arith.addf %104, %106 : vector<16x32xf32>
    %cst_70 = arith.constant 0.693147182 : f32
    %108 = vector.broadcast %cst_70 : f32 to vector<16x32xf32>
    %109 = arith.subf %107, %108 : vector<16x32xf32>
    %110 = arith.truncf %109 : vector<16x32xf32> to vector<16x32xbf16>
    %cst_71 = arith.constant dense<0.000000e+00> : vector<16x32xf32>
    %111 = tpu.matmul %110, %82, %cst_71 {dimension_numbers = #tpu.dot_dimension_numbers<[1], [0], [0], [1], [0, 0, 1, 1], [], []>} : vector<16x32xbf16>, vector<32x32xbf16>, vector<16x32xf32> -> vector<16x32xf32>
    %112 = vector.broadcast %84 : vector<1x32xf32> to vector<16x32xf32>
    %113 = arith.addf %111, %112 : vector<16x32xf32>
    %114 = arith.addf %76, %113 : vector<16x32xf32>
    %c6_72 = arith.constant 6 : index
    %c0_73 = arith.constant 0 : index
    %c0_74 = arith.constant 0 : index
    %115 = vector.load %arg4[%c6_72, %c0_73, %c0_74] : memref<9x32x32xbf16, #tpu.memory_space<vmem>>, vector<1x32x32xbf16>
    %116 = vector.shape_cast %115 : vector<1x32x32xbf16> to vector<32x32xbf16>
    %c7 = arith.constant 7 : index
    %c0_75 = arith.constant 0 : index
    %c0_76 = arith.constant 0 : index
    %117 = vector.load %arg4[%c7, %c0_75, %c0_76] : memref<9x32x32xbf16, #tpu.memory_space<vmem>>, vector<1x32x32xbf16>
    %118 = vector.shape_cast %117 : vector<1x32x32xbf16> to vector<32x32xbf16>
    %c8 = arith.constant 8 : index
    %c0_77 = arith.constant 0 : index
    %c0_78 = arith.constant 0 : index
    %119 = vector.load %arg4[%c8, %c0_77, %c0_78] : memref<9x32x32xbf16, #tpu.memory_space<vmem>>, vector<1x32x32xbf16>
    %120 = vector.shape_cast %119 : vector<1x32x32xbf16> to vector<32x32xbf16>
    %c4_79 = arith.constant 4 : index
    %c0_80 = arith.constant 0 : index
    %121 = vector.load %arg5[%c4_79, %c0_80] : memref<8x96xf32, #tpu.memory_space<vmem>>, vector<1x32xf32>
    %c7_81 = arith.constant 7 : index
    %c0_82 = arith.constant 0 : index
    %122 = vector.load %arg5[%c7_81, %c0_82] : memref<8x96xf32, #tpu.memory_space<vmem>>, vector<1x32xf32>
    %123 = arith.truncf %114 : vector<16x32xf32> to vector<16x32xbf16>
    %cst_83 = arith.constant dense<0.000000e+00> : vector<16x32xf32>
    %124 = tpu.matmul %123, %116, %cst_83 {dimension_numbers = #tpu.dot_dimension_numbers<[1], [0], [0], [1], [0, 0, 1, 1], [], []>} : vector<16x32xbf16>, vector<32x32xbf16>, vector<16x32xf32> -> vector<16x32xf32>
    %125 = arith.truncf %124 : vector<16x32xf32> to vector<16x32xbf16>
    %cst_84 = arith.constant dense<0.000000e+00> : vector<112x32xf32>
    %126 = tpu.matmul %1, %125, %cst_84 {dimension_numbers = #tpu.dot_dimension_numbers<[1], [0], [0], [1], [0, 0, 1, 1], [], []>} : vector<112x16xbf16>, vector<16x32xbf16>, vector<112x32xf32> -> vector<112x32xf32>
    %c2_85 = arith.constant 2 : index
    %c0_86 = arith.constant 0 : index
    %c0_87 = arith.constant 0 : index
    %127 = vector.load %arg7[%c2_85, %c0_86, %c0_87] : memref<3x112x32xf32, #tpu.memory_space<vmem>>, vector<1x112x32xf32>
    %128 = vector.shape_cast %127 : vector<1x112x32xf32> to vector<112x32xf32>
    %129 = arith.mulf %126, %128 : vector<112x32xf32>
    %130 = arith.truncf %129 : vector<112x32xf32> to vector<112x32xbf16>
    %cst_88 = arith.constant dense<0.000000e+00> : vector<16x32xf32>
    %131 = tpu.matmul %37, %130, %cst_88 {dimension_numbers = #tpu.dot_dimension_numbers<[1], [0], [0], [1], [0, 0, 1, 1], [], []>} : vector<16x112xbf16>, vector<112x32xbf16>, vector<16x32xf32> -> vector<16x32xf32>
    %132 = arith.truncf %131 : vector<16x32xf32> to vector<16x32xbf16>
    %cst_89 = arith.constant dense<0.000000e+00> : vector<16x32xf32>
    %133 = tpu.matmul %132, %118, %cst_89 {dimension_numbers = #tpu.dot_dimension_numbers<[1], [0], [0], [1], [0, 0, 1, 1], [], []>} : vector<16x32xbf16>, vector<32x32xbf16>, vector<16x32xf32> -> vector<16x32xf32>
    %134 = vector.broadcast %121 : vector<1x32xf32> to vector<16x32xf32>
    %135 = arith.addf %133, %134 : vector<16x32xf32>
    %136 = math.absf %135 : vector<16x32xf32>
    %cst_90 = arith.constant 0.000000e+00 : f32
    %137 = vector.broadcast %cst_90 : f32 to vector<16x32xf32>
    %138 = arith.subf %137, %136 : vector<16x32xf32>
    %139 = math.exp %138 : vector<16x32xf32>
    %cst_91 = arith.constant 1.000000e+00 : f32
    %140 = vector.broadcast %cst_91 : f32 to vector<16x32xf32>
    %141 = arith.addf %140, %139 : vector<16x32xf32>
    %142 = math.log %141 : vector<16x32xf32>
    %cst_92 = arith.constant 0.000000e+00 : f32
    %143 = vector.broadcast %cst_92 : f32 to vector<16x32xf32>
    %144 = arith.maximumf %135, %143 : vector<16x32xf32>
    %145 = arith.addf %142, %144 : vector<16x32xf32>
    %cst_93 = arith.constant 0.693147182 : f32
    %146 = vector.broadcast %cst_93 : f32 to vector<16x32xf32>
    %147 = arith.subf %145, %146 : vector<16x32xf32>
    %148 = arith.truncf %147 : vector<16x32xf32> to vector<16x32xbf16>
    %cst_94 = arith.constant dense<0.000000e+00> : vector<16x32xf32>
    %149 = tpu.matmul %148, %120, %cst_94 {dimension_numbers = #tpu.dot_dimension_numbers<[1], [0], [0], [1], [0, 0, 1, 1], [], []>} : vector<16x32xbf16>, vector<32x32xbf16>, vector<16x32xf32> -> vector<16x32xf32>
    %150 = vector.broadcast %122 : vector<1x32xf32> to vector<16x32xf32>
    %151 = arith.addf %149, %150 : vector<16x32xf32>
    %152 = arith.addf %114, %151 : vector<16x32xf32>
    %c0_95 = arith.constant 0 : index
    %c0_96 = arith.constant 0 : index
    %153 = vector.load %arg6[%c0_95, %c0_96] : memref<16x32xf32, #tpu.memory_space<vmem>>, vector<16x32xf32>
    tpu.vector_store %arg6[%c0_95, %c0_96], %152 {strides = array<i32>} : memref<16x32xf32, #tpu.memory_space<vmem>>, vector<16x32xf32>,
    return
  }
}

</mosaic_0001>

<bundles_post_ra>
// kernel: sub.16
= control target key start
LH: loop header
LB: loop body
LE: loop exit
PB: predicated region body
PF: predicated region fallthrough
CT: control target
= control target key end

     0   :  { %s133_s10 = smov 105   ;;  %s134_s11 = smov 91   ;;  %vm3_vm0 = vcmask 56320   ;;  %vm9_vm1 = vcmask 917320   ;;  %vm15_vm2 = vcmask 859920   ;;  %vm21_vm3 = vcmask 802520   ;;  %s209_s0 = inlined_call_operand.vmem [shape: f32[2,8,7], index: 0, kind: input, shape index: {}]   ;;  %s210_s1 = inlined_call_operand.vmem [shape: f32[112], index: 1, kind: output, shape index: {}]  }
   0x1   :  { %v103_v0 = vld [vmem:[%s209_s0 + $0xf] sm:$0x1]   ;;  %v105_v1 = vld [vmem:[%s209_s0 + $0xd] sm:$0x1]   ;;  %v104_v2 = vld [vmem:[%s209_s0 + $0xe] sm:$0x1]  }
   0x2   :  { %7 = vrot.lane.b32.xlu0 %v103_v0, %s133_s10  ;;  %19 = vrot.lane.b32.xlu1 %v105_v1, %s134_s11  ;;  %v106_v3 = vld [vmem:[%s209_s0 + $0xc] sm:$0x1]   ;;  %s135_s16 = smov 98   ;;  %s136_s17 = smov 84   ;;  %v107_v4 = vld [vmem:[%s209_s0 + $0xb] sm:$0x1]  }
   0x3   :  { %v108_v5 = vld [vmem:[%s209_s0 + $0xa] sm:$0x1]   ;;  %v2_v6 = vld [vmem:[%s209_s0] sm:$0x1]   ;;  %s137_s24 = smov 77   ;;  %s138_s25 = smov 70  }
   0x4   :  { %4 = vst.msk [vmem:[#allocation0] sm:$0x1] %vm3_vm0, %v2_v6   ;;  %v109_v7 = vld [vmem:[%s209_s0 + $0x9] sm:$0x1]   ;;  %v110_v8 = vld [vmem:[%s209_s0 + $0x8] sm:$0x1]  }
   0x5   :  { %s139_s30 = smov 63   ;;  %s140_s2 = smov 56   ;;  %v111_v9 = vld [vmem:[%s209_s0 + $0x7] sm:$0x1]   ;;  %v112_v10 = vld [vmem:[%s209_s0 + $0x6] sm:$0x1]  }
   0x6   :  { %13 = vrot.lane.b32.xlu0 %v104_v2, %s135_s16  ;;  %25 = vrot.lane.b32.xlu1 %v106_v3, %s136_s17  ;;  %s141_s7 = smov 49   ;;  %s142_s8 = smov 42   ;;  %v113_v11 = vld [vmem:[%s209_s0 + $0x5] sm:$0x1]   ;;  %v114_v12 = vld [vmem:[%s209_s0 + $0x4] sm:$0x1]  }
   0x7   :  { %s143_s13 = smov 35   ;;  %s144_s14 = smov 28   ;;  %v115_v13 = vld [vmem:[%s209_s0 + $0x3] sm:$0x1]   ;;  %v116_v14 = vld [vmem:[%s209_s0 + $0x2] sm:$0x1]  }
   0x8   :  { %s145_s19 = smov 21   ;;  %s146_s20 = smov 14   ;;  %v117_v15 = vld [vmem:[%s209_s0 + $0x1] sm:$0x1]   ;;  %vm27_vm4 = vcmask 745120   ;;  %vm33_vm5 = vcmask 687720  }
   0x9   :  { %s147_s0 = smov 7   ;;  %vm39_vm6 = vcmask 630320   ;;  %vm45_vm7 = vcmask 572920   ;;  %vm51_vm8 = vcmask 515520   ;;  %vm57_vm9 = vcmask 458120  }
   0xa   :  { %31 = vrot.lane.b32.xlu0 %v107_v4, %s137_s24  ;;  %37 = vrot.lane.b32.xlu1 %v108_v5, %s138_s25  ;;  %vm63_vm10 = vcmask 400720   ;;  %vm69_vm11 = vcmask 343320   ;;  %vm75_vm12 = vcmask 285920   ;;  %vm81_vm13 = vcmask 228520  }
   0xb   :  { %vm87_vm14 = vcmask 171120   ;;  %vm93_vm15 = vcmask 113720  }
   0xe   :  { %43 = vrot.lane.b32.xlu0 %v109_v7, %s139_s30  ;;  %49 = vrot.lane.b32.xlu1 %v110_v8, %s140_s2 }
  0x12   :  { %55 = vrot.lane.b32.xlu0 %v111_v9, %s141_s7  ;;  %61 = vrot.lane.b32.xlu1 %v112_v10, %s142_s8 }
  0x16   :  { %67 = vrot.lane.b32.xlu0 %v113_v11, %s143_s13  ;;  %73 = vrot.lane.b32.xlu1 %v114_v12, %s144_s14 }
  0x1a   :  { %79 = vrot.lane.b32.xlu0 %v115_v13, %s145_s19  ;;  %85 = vrot.lane.b32.xlu1 %v116_v14, %s146_s20 }
  0x1e   :  { %91 = vrot.lane.b32.xlu0 %v117_v15, %s147_s0 }
  0x74   :  { %v8_v16 = vpop.permute.xlu0 %7   ;;  %v20_v17 = vpop.permute.xlu1 %19  }
  0x75   :  { %10 = vst.msk [vmem:[#allocation0] sm:$0x1] %vm9_vm1, %v8_v16  }
  0x78   :  { %v14_v18 = vpop.permute.xlu0 %13   ;;  %v26_v19 = vpop.permute.xlu1 %25  }
  0x79   :  { %16 = vst.msk [vmem:[#allocation0] sm:$0x1] %vm15_vm2, %v14_v18  }
  0x7a   :  { %22 = vst.msk [vmem:[#allocation0] sm:$0x1] %vm21_vm3, %v20_v17  }
  0x7b   :  { %28 = vst.msk [vmem:[#allocation0] sm:$0x1] %vm27_vm4, %v26_v19  }
  0x7c   :  { %v32_v20 = vpop.permute.xlu0 %31   ;;  %v38_v21 = vpop.permute.xlu1 %37  }
  0x7d   :  { %34 = vst.msk [vmem:[#allocation0] sm:$0x1] %vm33_vm5, %v32_v20  }
  0x7e   :  { %40 = vst.msk [vmem:[#allocation0] sm:$0x1] %vm39_vm6, %v38_v21  }
  0x80   :  { %v44_v22 = vpop.permute.xlu0 %43   ;;  %v50_v23 = vpop.permute.xlu1 %49  }
  0x81   :  { %46 = vst.msk [vmem:[#allocation0] sm:$0x1] %vm45_vm7, %v44_v22  }
  0x82   :  { %52 = vst.msk [vmem:[#allocation0] sm:$0x1] %vm51_vm8, %v50_v23  }
  0x84   :  { %v56_v24 = vpop.permute.xlu0 %55   ;;  %v62_v25 = vpop.permute.xlu1 %61  }
  0x85   :  { %58 = vst.msk [vmem:[#allocation0] sm:$0x1] %vm57_vm9, %v56_v24  }
  0x86   :  { %64 = vst.msk [vmem:[#allocation0] sm:$0x1] %vm63_vm10, %v62_v25  }
  0x88   :  { %v68_v26 = vpop.permute.xlu0 %67   ;;  %v74_v27 = vpop.permute.xlu1 %73  }
  0x89   :  { %70 = vst.msk [vmem:[#allocation0] sm:$0x1] %vm69_vm11, %v68_v26  }
  0x8a   :  { %76 = vst.msk [vmem:[#allocation0] sm:$0x1] %vm75_vm12, %v74_v27  }
  0x8c   :  { %v80_v28 = vpop.permute.xlu0 %79   ;;  %v86_v29 = vpop.permute.xlu1 %85  }
  0x8d   :  { %82 = vst.msk [vmem:[#allocation0] sm:$0x1] %vm81_vm13, %v80_v28  }
  0x8e   :  { %88 = vst.msk [vmem:[#allocation0] sm:$0x1] %vm87_vm14, %v86_v29  }
  0x90   :  { %v92_v30 = vpop.permute.xlu0 %91  }
  0x91   :  { %94 = vst.msk [vmem:[#allocation0] sm:$0x1] %vm93_vm15, %v92_v30  }
  0x98   :  { %v99_v31 = vld [vmem:[#allocation0] sm:$0x1] }
  0x99   :  { %102 = vst [vmem:[%s210_s1] sm:$0x1] %v99_v31 }

// kernel: schnet_forward.1
= control target key start
LH: loop header
LB: loop body
LE: loop exit
PB: predicated region body
PF: predicated region fallthrough
CT: control target
= control target key end

     0   :  { %v2548_v1 = vmov 0.0   ;;  %vm2549_vm0 = vmmov 0   ;;  %s2550_s29 = smov 96   ;;  %vm108_vm1 = vcmask 261120   ;;  %s3247_s0 = inlined_call_operand.vmem [shape: f32[16,32], index: 0, kind: input, shape index: {}]   ;;  %s3248_s1 = inlined_call_operand.vmem [shape: bf16[112,48], index: 1, kind: input, shape index: {}]   ;;  %s3249_s2 = inlined_call_operand.vmem [shape: bf16[16,112], index: 2, kind: input, shape index: {}]   ;;  %s3250_s3 = inlined_call_operand.vmem [shape: bf16[128,96], index: 3, kind: input, shape index: {}]   ;;  %s3251_s4 = inlined_call_operand.vmem [shape: bf16[9,32,32], index: 4, kind: input, shape index: {}]   ;;  %s3252_s5 = inlined_call_operand.vmem [shape: f32[8,96], index: 5, kind: input, shape index: {}]   ;;  %s3253_s6 = inlined_call_operand.hbm [shape: f32[16,32], index: 6, kind: output, shape index: {}]  }
   0x1   :  { %v2410_v0 = vld [vmem:[%s3250_s3 + $0x8] sm:$0xff]   ;;  %2115 = vmatprep.subr.bf16.mxu0 %v2548_v1  ;;  %v2411_v2 = vld [vmem:[%s3250_s3] sm:$0xff]   ;;  %2147 = vmatprep.subr.bf16.mxu1 %v2548_v1  ;;  %v2414_v4 = vld [vmem:[%s3248_s1 + $0x10] sm:$0xff]  }
   0x2   :  { %2116 = vmatpush3.bf16.msra.mxu0 %v2410_v0  ;;  %2119 = vmatprep.mubr.msk.bf16.mxu0 %vm2549_vm0, %v2548_v1  ;;  %v2412_v3 = vld [vmem:[%s3248_s1] sm:$0xff]   ;;  %v2413_v5 = vld [vmem:[%s3248_s1 + $0x8] sm:$0xff]   ;;  %v2415_v7 = vld [vmem:[%s3248_s1 + $0x18] sm:$0xff]  }
   0x3   :  { %2117 = vmatprep.subr.bf16.mxu0 %v2548_v1  ;;  %2159 = vmatprep.mubr.msk.bf16.mxu1 %vm2549_vm0, %v2548_v1  ;;  %v2416_v6 = vld [vmem:[%s3251_s4 + $0x8] sm:$0xff]   ;;  %v2417_v8 = vld [vmem:[%s3248_s1 + $0x20] sm:$0xff]   ;;  %v2419_v11 = vld [vmem:[%s3248_s1 + $0x30] sm:$0xff]  }
   0x4   :  { %737 = vrot.lane.b32.xlu0 %v2412_v3, %s2550_s29  ;;  %741 = vrot.lane.b32.xlu1 %v2414_v4, %s2550_s29  ;;  %v2420_v9 = vld [vmem:[%s3251_s4] sm:$0xff]   ;;  %v2418_v10 = vld [vmem:[%s3248_s1 + $0x28] sm:$0xff]  }
   0x6   :  { %2118 = vmatpush3.bf16.msra.mxu0 %v2411_v2 }
   0x7   :  { %2187 = vmatprep.subr.bf16.mxu0 %v2548_v1 }
   0x8   :  { %739 = vrot.lane.b32.xlu0 %v2413_v5, %s2550_s29  ;;  %743 = vrot.lane.b32.xlu1 %v2415_v7, %s2550_s29 }
   0x9   :  { %2120 = vmatmul.mubr.msk.bf16.vlgmr.msra.gmra.mxu0 %vm108_vm1, %v2412_v3 }
   0xa   :  { %2123 = vmatprep.mubr.msk.bf16.mxu0 %vm2549_vm0, %v2548_v1  ;;  %2188 = vmatpush3.bf16.msra.mxu0 %v2416_v6 }
   0xb   :  { %2189 = vmatprep.subr.bf16.mxu0 %v2548_v1 }
   0xc   :  { %745 = vrot.lane.b32.xlu0 %v2417_v8, %s2550_s29  ;;  %747 = vrot.lane.b32.xlu1 %v2418_v10, %s2550_s29 }
   0xe   :  { %2190 = vmatpush3.bf16.msra.mxu0 %v2420_v9 }
   0xf   :  { %2195 = vmatprep.subr.bf16.mxu0 %v2548_v1 }
  0x10   :  { %749 = vrot.lane.b32.xlu0 %v2419_v11, %s2550_s29 }
  0x11   :  { %2124 = vmatmul.mubr.msk.bf16.gmra.mxu0 %vm108_vm1, %v2413_v5 }
  0x12   :  { %2127 = vmatprep.mubr.msk.bf16.mxu0 %vm2549_vm0, %v2548_v1 }
  0x19   :  { %2128 = vmatmul.mubr.msk.bf16.gmra.mxu0 %vm108_vm1, %v2414_v4 }
  0x1a   :  { %2131 = vmatprep.mubr.msk.bf16.mxu0 %vm2549_vm0, %v2548_v1 }
  0x1b   :  { %11 = vsyncpa [#allocation4], 0  ;;  %v661_v12 = vld [vmem:[%s3247_s0] sm:$0xff]  ;;  %v662_v13 = vld [vmem:[%s3247_s0 + $0x8] sm:$0xff]  ;;  %vm406_vm2 = vcmask 785408   ;;  %vm751_vm3 = vcmask 130048  }
  0x1c   :  { %v679_v14 = vpack.c.bf16 %v662_v13, %v661_v12  ;;  %v2421_v15 = vld [vmem:[%s3250_s3 + $0x38] sm:$0xff]   ;;  %v2422_v16 = vld [vmem:[%s3250_s3 + $0x30] sm:$0xff]   ;;  %v2423_v17 = vld [vmem:[%s3250_s3 + $0x28] sm:$0xff]   ;;  %s2551_s15 = smov 64   ;;  %vm902_vm4 = vcmask 916480   ;;  %s2552_s11 = smov [#allocation3]  }
  0x1d   :  { %2148 = vmatpush3.bf16.msra.mxu1 %v2421_v15  ;;  %v2424_v18 = vld [vmem:[%s3250_s3 + $0x20] sm:$0xff]   ;;  %v2425_v19 = vld [vmem:[%s3250_s3 + $0x18] sm:$0xff]   ;;  %v2426_v20 = vld [vmem:[%s3250_s3 + $0x10] sm:$0xff]  }
  0x1e   :  { %2149 = vmatprep.subr.bf16.mxu1 %v2548_v1  ;;  %v2697_v21 = vld [vmem:[%s3252_s5] ss:$0 sm:$0xff] }
  0x21   :  { %2132 = vmatmul.mubr.msk.bf16.gmra.mxu0 %vm108_vm1, %v2415_v7  ;;  %2150 = vmatpush3.bf16.msra.mxu1 %v2422_v16 }
  0x22   :  { %2135 = vmatprep.mubr.msk.bf16.mxu0 %vm2549_vm0, %v2548_v1  ;;  %2151 = vmatprep.subr.bf16.mxu1 %v2548_v1 }
  0x25   :  { %2152 = vmatpush3.bf16.msra.mxu1 %v2423_v17 }
  0x26   :  { %2153 = vmatprep.subr.bf16.mxu1 %v2548_v1 }
  0x29   :  { %2136 = vmatmul.mubr.msk.bf16.gmra.mxu0 %vm108_vm1, %v2417_v8  ;;  %2154 = vmatpush3.bf16.msra.mxu1 %v2424_v18 }
  0x2a   :  { %2139 = vmatprep.mubr.msk.bf16.mxu0 %vm2549_vm0, %v2548_v1  ;;  %2155 = vmatprep.subr.bf16.mxu1 %v2548_v1 }
  0x2d   :  { %2156 = vmatpush3.bf16.msra.mxu1 %v2425_v19 }
  0x2e   :  { %2157 = vmatprep.subr.bf16.mxu1 %v2548_v1 }
  0x31   :  { %2140 = vmatmul.mubr.msk.bf16.gmra.mxu0 %vm108_vm1, %v2418_v10  ;;  %2158 = vmatpush3.bf16.msra.mxu1 %v2426_v20 }
  0x32   :  { %2143 = vmatprep.mubr.msk.bf16.mxu0 %vm2549_vm0, %v2548_v1  ;;  %2225 = vmatprep.subr.bf16.mxu1 %v2548_v1 }
  0x39   :  { %2144 = vmatmul.mubr.msk.bf16.gmra.mxu0 %vm108_vm1, %v2419_v11 }
  0x3a   :  { %2191 = vmatprep.mubr.msk.bf16.mxu0 %vm2549_vm0, %v2548_v1 }
  0x41   :  { %2192 = vmatmul.mubr.msk.bf16.vlgmr.msra.gmra.mxu0 %vm108_vm1, %v679_v14 }
  0x42   :  { %2197 = vmatprep.mubr.msk.bf16.mxu0 %vm2549_vm0, %v2548_v1 }
  0xc9   :  { %v164_v22 = vpop.f32.mrf.mxu0 }
  0xca   :  { %v2700_v23 = vadd.f32 %v2697_v21, %v164_v22 }
  0xcb   :  { %v2121_v24 = vpop.f32.mrf.mxu0 }
  0xcc   :  { %v219_v25 = vand.u32 2147483647, %v2700_v23 }
  0xcd   :  { %v167_v26 = vpop.f32.mrf.mxu0 }
  0xce   :  { %v233_v27 = vsub.f32 0.0, %v219_v25  ;;  %v2704_v28 = vadd.f32 %v2697_v21, %v167_v26 }
  0xcf   :  { %v2122_v29 = vpop.f32.mrf.mxu0 }
  0xd0   :  { %v247_v30 = vmul.f32 1.442695, %v233_v27  ;;  %v220_v31 = vand.u32 2147483647, %v2704_v28 }
  0xd1   :  { %v172_v32 = vpop.f32.mrf.mxu0 }
  0xd2   :  { %2444 = vpow2.f32 %v247_v30  ;;  %v234_v33 = vsub.f32 0.0, %v220_v31  ;;  %v2708_v34 = vadd.f32 %v2697_v21, %v172_v32  ;;  %v317_v31 = vmax.f32 %v2700_v23, 0.0 }
  0xd3   :  { %v2125_v35 = vpop.f32.mrf.mxu0 }
  0xd4   :  { %v249_v36 = vmul.f32 1.442695, %v234_v33  ;;  %v221_v37 = vand.u32 2147483647, %v2708_v34 }
  0xd5   :  { %v175_v38 = vpop.f32.mrf.mxu0 }
  0xd6   :  { %2446 = vpow2.f32 %v249_v36  ;;  %v235_v39 = vsub.f32 0.0, %v221_v37  ;;  %v2712_v40 = vadd.f32 %v2697_v21, %v175_v38 }
  0xd7   :  { %v2126_v41 = vpop.f32.mrf.mxu0 }
  0xd8   :  { %v251_v42 = vmul.f32 1.442695, %v235_v39  ;;  %v222_v43 = vand.u32 2147483647, %v2712_v40 }
  0xd9   :  { %v180_v44 = vpop.f32.mrf.mxu0 }
  0xda   :  { %2448 = vpow2.f32 %v251_v42  ;;  %v236_v45 = vsub.f32 0.0, %v222_v43  ;;  %v2716_v46 = vadd.f32 %v2697_v21, %v180_v44  ;;  %v318_v43 = vmax.f32 %v2704_v28, 0.0 }
  0xdb   :  { %v2129_v47 = vpop.f32.mrf.mxu0 }
  0xdc   :  { %v253_v48 = vmul.f32 1.442695, %v236_v45  ;;  %v223_v49 = vand.u32 2147483647, %v2716_v46 }
  0xdd   :  { %v183_v50 = vpop.f32.mrf.mxu0 }
  0xde   :  { %2450 = vpow2.f32 %v253_v48  ;;  %v237_v51 = vsub.f32 0.0, %v223_v49  ;;  %v2720_v52 = vadd.f32 %v2697_v21, %v183_v50 }
  0xdf   :  { %v2445_v53 = vpop.eup %2444  ;;  %v2130_v54 = vpop.f32.mrf.mxu0 }
  0xe0   :  { %v275_v55 = vadd.f32 1.0, %v2445_v53  ;;  %v255_v56 = vmul.f32 1.442695, %v237_v51  ;;  %v224_v57 = vand.u32 2147483647, %v2720_v52 }
  0xe1   :  { %v188_v58 = vpop.f32.mrf.mxu0 }
  0xe2   :  { %2452 = vlog2.f32 %v275_v55  ;;  %v238_v59 = vsub.f32 0.0, %v224_v57  ;;  %v2724_v60 = vadd.f32 %v2697_v21, %v188_v58  ;;  %v319_v58 = vmax.f32 %v2708_v34, 0.0 }
  0xe3   :  { %v2447_v61 = vpop.eup %2446  ;;  %2454 = vpow2.f32 %v255_v56  ;;  %v2133_v62 = vpop.f32.mrf.mxu0 }
  0xe4   :  { %v276_v63 = vadd.f32 1.0, %v2447_v61  ;;  %v257_v0 = vmul.f32 1.442695, %v238_v59  ;;  %v225_v2 = vand.u32 2147483647, %v2724_v60 }
  0xe5   :  { %v191_v3 = vpop.f32.mrf.mxu0 }
  0xe6   :  { %2456 = vlog2.f32 %v276_v63  ;;  %v239_v4 = vsub.f32 0.0, %v225_v2  ;;  %v2728_v5 = vadd.f32 %v2697_v21, %v191_v3 }
  0xe7   :  { %v2449_v6 = vpop.eup %2448  ;;  %2458 = vpow2.f32 %v257_v0  ;;  %v2134_v7 = vpop.f32.mrf.mxu0 }
  0xe8   :  { %v277_v8 = vadd.f32 1.0, %v2449_v6  ;;  %v259_v9 = vmul.f32 1.442695, %v239_v4  ;;  %v226_v10 = vand.u32 2147483647, %v2728_v5 }
  0xe9   :  { %v196_v11 = vpop.f32.mrf.mxu0 }
  0xea   :  { %2460 = vlog2.f32 %v277_v8  ;;  %v240_v12 = vsub.f32 0.0, %v226_v10  ;;  %v2732_v13 = vadd.f32 %v2697_v21, %v196_v11 }
  0xeb   :  { %v2451_v14 = vpop.eup %2450  ;;  %2462 = vpow2.f32 %v259_v9  ;;  %v2137_v15 = vpop.f32.mrf.mxu0  ;;  %v320_v9 = vmax.f32 %v2712_v40, 0.0 }
  0xec   :  { %v278_v16 = vadd.f32 1.0, %v2451_v14  ;;  %v261_v17 = vmul.f32 1.442695, %v240_v12  ;;  %v227_v18 = vand.u32 2147483647, %v2732_v13 }
  0xed   :  { %v199_v19 = vpop.f32.mrf.mxu0 }
  0xee   :  { %2464 = vlog2.f32 %v278_v16  ;;  %v241_v20 = vsub.f32 0.0, %v227_v18  ;;  %v2736_v22 = vadd.f32 %v2697_v21, %v199_v19 }
  0xef   :  { %v2453_v24 = vpop.eup %2452  ;;  %2466 = vpow2.f32 %v261_v17  ;;  %v2138_v25 = vpop.f32.mrf.mxu0 }
  0xf0   :  { %v2455_v26 = vpop.eup %2454  ;;  %v290_v27 = vmul.f32 0.6931472, %v2453_v24  ;;  %v263_v29 = vmul.f32 1.442695, %v241_v20  ;;  %v228_v30 = vand.u32 2147483647, %v2736_v22 }
  0xf1   :  { %v279_v32 = vadd.f32 1.0, %v2455_v26  ;;  %v204_v33 = vpop.f32.mrf.mxu0 }
  0xf2   :  { %2468 = vpow2.f32 %v263_v29  ;;  %v242_v35 = vsub.f32 0.0, %v228_v30  ;;  %v2741_v36 = vadd.f32 %v2697_v21, %v204_v33  ;;  %v331_v38 = vadd.f32 %v317_v31, %v290_v27 }
  0xf3   :  { %v2457_v37 = vpop.eup %2456  ;;  %2470 = vlog2.f32 %v279_v32  ;;  %v2141_v39 = vpop.f32.mrf.mxu0 }
  0xf4   :  { %v2459_v41 = vpop.eup %2458  ;;  %v292_v42 = vmul.f32 0.6931472, %v2457_v37  ;;  %v265_v44 = vmul.f32 1.442695, %v242_v35  ;;  %v229_v47 = vand.u32 2147483647, %v2741_v36 }
  0xf5   :  { %v280_v45 = vadd.f32 1.0, %v2459_v41  ;;  %v207_v23 = vpop.f32.mrf.mxu0  ;;  %v1894_v51 = vadd.f32 -0.6931472, %v331_v38 }
  0xf6   :  { %v332_v48 = vadd.f32 %v318_v43, %v292_v42  ;;  %2472 = vpow2.f32 %v265_v44  ;;  %v2746_v49 = vadd.f32 %v2697_v21, %v207_v23  ;;  %v243_v53 = vsub.f32 0.0, %v229_v47  ;;  %v2767_v23 = vpop.permute.xlu0 %737 }
  0xf7   :  { %v2461_v50 = vpop.eup %2460  ;;  %2474 = vlog2.f32 %v280_v45  ;;  %v2142_v54 = vpop.f32.mrf.mxu0  ;;  %v322_v42 = vmax.f32 %v2720_v52, 0.0 }
  0xf8   :  { %v2463_v55 = vpop.eup %2462  ;;  %v1895_v56 = vadd.f32 -0.6931472, %v332_v48  ;;  %v294_v57 = vmul.f32 0.6931472, %v2461_v50  ;;  %v230_v28 = vand.u32 2147483647, %v2746_v49 }
  0xf9   :  { %v281_v59 = vadd.f32 1.0, %v2463_v55  ;;  %v267_v61 = vmul.f32 1.442695, %v243_v53  ;;  %v212_v62 = vpop.f32.mrf.mxu0 }
  0xfa   :  { %v359_v63 = vpack.c.bf16 %v1895_v56, %v1894_v51  ;;  %v244_v0 = vsub.f32 0.0, %v230_v28  ;;  %v2751_v2 = vadd.f32 %v2697_v21, %v212_v62  ;;  %v333_v4 = vadd.f32 %v319_v58, %v294_v57 }
  0xfb   :  { %v2465_v3 = vpop.eup %2464  ;;  %2476 = vlog2.f32 %v281_v59  ;;  %v2145_v6 = vpop.f32.mrf.mxu0  ;;  %v323_v56 = vmax.f32 %v2724_v60, 0.0 }
  0xfc   :  { %v2467_v7 = vpop.eup %2466  ;;  %v296_v8 = vmul.f32 0.6931472, %v2465_v3  ;;  %2478 = vpow2.f32 %v267_v61  ;;  %v269_v10 = vmul.f32 1.442695, %v244_v0  ;;  %2160 = vmatmul.mubr.msk.bf16.vlgmr.msra.gmra.mxu1 %vm406_vm2, %v359_v63  ;;  %v231_v11 = vand.u32 2147483647, %v2751_v2  ;;  %v2779_v3 = vpop.permute.xlu0 %739 }
  0xfd   :  { %v282_v34 = vadd.f32 1.0, %v2467_v7  ;;  %v215_v12 = vpop.f32.mrf.mxu0  ;;  %2163 = vmatprep.mubr.msk.bf16.mxu1 %vm2549_vm0, %v2548_v1  ;;  %v1896_v17 = vadd.f32 -0.6931472, %v333_v4  ;;  %v324_v61 = vmax.f32 %v2728_v5, 0.0 }
  0xfe   :  { %v334_v14 = vadd.f32 %v320_v9, %v296_v8  ;;  %2480 = vpow2.f32 %v269_v10  ;;  %v2759_v15 = vadd.f32 %v2697_v21, %v215_v12  ;;  %v245_v40 = vsub.f32 0.0, %v231_v11 }
  0xff   :  { %v2469_v16 = vpop.eup %2468  ;;  %2482 = vlog2.f32 %v282_v34  ;;  %v2146_v18 = vpop.f32.mrf.mxu0  ;;  %v321_v21 = vmax.f32 %v2716_v46, 0.0  ;;  %v325_v8 = vmax.f32 %v2732_v13, 0.0  ;;  %v326_v12 = vmax.f32 %v2736_v22, 0.0 }
 0x100   :  { %v2471_v19 = vpop.eup %2470  ;;  %v1897_v20 = vadd.f32 -0.6931472, %v334_v14  ;;  %v283_v24 = vadd.f32 1.0, %v2469_v16  ;;  %v232_v25 = vand.u32 2147483647, %v2759_v15  ;;  %v327_v22 = vmax.f32 %v2741_v36, 0.0 }
 0x101   :  { %v298_v26 = vmul.f32 0.6931472, %v2471_v19  ;;  %v271_v27 = vmul.f32 1.442695, %v245_v40  ;;  %v729_v29 = vpop.f32.mrf.mxu0  ;;  %v2790_v40 = vpop.permute.xlu1 %741 }
 0x102   :  { %v360_v30 = vpack.c.bf16 %v1897_v20, %v1896_v17  ;;  %2484 = vlog2.f32 %v283_v24  ;;  %v246_v31 = vsub.f32 0.0, %v232_v25 }
 0x103   :  { %v2473_v32 = vpop.eup %2472  ;;  %2486 = vpow2.f32 %v271_v27  ;;  %v2193_v33 = vpop.f32.mrf.mxu0  ;;  %v335_v39 = vadd.f32 %v321_v21, %v298_v26  ;;  %v328_v27 = vmax.f32 %v2746_v49, 0.0 }
 0x104   :  { %v2475_v35 = vpop.eup %2474  ;;  %v284_v37 = vadd.f32 1.0, %v2473_v32  ;;  %v273_v38 = vmul.f32 1.442695, %v246_v31  ;;  %2164 = vmatmul.mubr.msk.bf16.gmra.mxu1 %vm406_vm2, %v360_v30 }
 0x105   :  { %v300_v41 = vmul.f32 0.6931472, %v2475_v35  ;;  %v732_v43 = vpop.f32.mrf.mxu0  ;;  %2167 = vmatprep.mubr.msk.bf16.mxu1 %vm2549_vm0, %v2548_v1  ;;  %v1898_v50 = vadd.f32 -0.6931472, %v335_v39  ;;  %v2801_v32 = vpop.permute.xlu1 %743  ;;  %v329_v35 = vmax.f32 %v2751_v2, 0.0  ;;  %v330_v39 = vmax.f32 %v2759_v15, 0.0 }
 0x106   :  { %2488 = vlog2.f32 %v284_v37  ;;  %v736_v44 = vpack.c.bf16 %v732_v43, %v729_v29 }
 0x107   :  { %v336_v45 = vadd.f32 %v322_v42, %v300_v41  ;;  %2490 = vpow2.f32 %v273_v38  ;;  %v2194_v46 = vpop.f32.mrf.mxu0  ;;  %v2812_v42 = vpop.permute.xlu0 %745 }
 0x108   :  { %v2477_v47 = vpop.eup %2476  ;;  %2196 = vmatpush3.bf16.msra.mxu0 %v736_v44  ;;  %v2836_v46 = vld [vmem:[%s3252_s5 + $0x1] ss:$0 sm:$0xff] }
 0x109   :  { %v2479_v48 = vpop.eup %2478  ;;  %v1899_v51 = vadd.f32 -0.6931472, %v336_v45  ;;  %v302_v53 = vmul.f32 0.6931472, %v2477_v47  ;;  %2297 = vmatprep.subr.bf16.mxu0 %v2548_v1  ;;  %v2821_v15 = vpop.permute.xlu1 %747 }
 0x10a   :  { %v285_v52 = vadd.f32 1.0, %v2479_v48 }
 0x10b   :  { %v2481_v54 = vpop.eup %2480  ;;  %v361_v55 = vpack.c.bf16 %v1899_v51, %v1898_v50  ;;  %2198 = vmatmul.mubr.msk.bf16.vlgmr.msra.gmra.mxu0 %vm751_vm3, %v2767_v23  ;;  %v337_v58 = vadd.f32 %v323_v56, %v302_v53  ;;  %v2827_v45 = vpop.permute.xlu0 %749 }
 0x10c   :  { %v2483_v57 = vpop.eup %2482  ;;  %2492 = vlog2.f32 %v285_v52  ;;  %v286_v28 = vadd.f32 1.0, %v2481_v54  ;;  %2201 = vmatprep.mubr.msk.bf16.mxu0 %vm2549_vm0, %v2548_v1 }
 0x10d   :  { %v304_v59 = vmul.f32 0.6931472, %v2483_v57  ;;  %2168 = vmatmul.mubr.msk.bf16.gmra.mxu1 %vm406_vm2, %v361_v55  ;;  %v1900_v4 = vadd.f32 -0.6931472, %v337_v58 }
 0x10e   :  { %2494 = vlog2.f32 %v286_v28  ;;  %2171 = vmatprep.mubr.msk.bf16.mxu1 %vm2549_vm0, %v2548_v1 }
 0x10f   :  { %v2485_v60 = vpop.eup %2484  ;;  %v338_v62 = vadd.f32 %v324_v61, %v304_v59 }
 0x110   :  { %v2487_v63 = vpop.eup %2486  ;;  %v306_v0 = vmul.f32 0.6931472, %v2485_v60 }
 0x111   :  { %v1901_v6 = vadd.f32 -0.6931472, %v338_v62  ;;  %v287_v7 = vadd.f32 1.0, %v2487_v63 }
 0x112   :  { %v339_v34 = vadd.f32 %v325_v8, %v306_v0 }
 0x113   :  { %v2489_v9 = vpop.eup %2488  ;;  %v362_v10 = vpack.c.bf16 %v1901_v6, %v1900_v4  ;;  %2496 = vlog2.f32 %v287_v7  ;;  %2202 = vmatmul.mubr.msk.bf16.gmra.mxu0 %vm751_vm3, %v2779_v3 }
 0x114   :  { %v2491_v5 = vpop.eup %2490  ;;  %v308_v11 = vmul.f32 0.6931472, %v2489_v9  ;;  %2205 = vmatprep.mubr.msk.bf16.mxu0 %vm2549_vm0, %v2548_v1  ;;  %v1902_v13 = vadd.f32 -0.6931472, %v339_v34 }
 0x115   :  { %v288_v14 = vadd.f32 1.0, %v2491_v5  ;;  %2172 = vmatmul.mubr.msk.bf16.gmra.mxu1 %vm406_vm2, %v362_v10 }
 0x116   :  { %v340_v16 = vadd.f32 %v326_v12, %v308_v11  ;;  %2175 = vmatprep.mubr.msk.bf16.mxu1 %vm2549_vm0, %v2548_v1 }
 0x117   :  { %2498 = vlog2.f32 %v288_v14 }
 0x118   :  { %v1903_v17 = vadd.f32 -0.6931472, %v340_v16 }
 0x119   :  { %v2493_v18 = vpop.eup %2492 }
 0x11a   :  { %v363_v19 = vpack.c.bf16 %v1903_v17, %v1902_v13  ;;  %v310_v20 = vmul.f32 0.6931472, %v2493_v18 }
 0x11b   :  { %v2495_v24 = vpop.eup %2494  ;;  %2206 = vmatmul.mubr.msk.bf16.gmra.mxu0 %vm751_vm3, %v2790_v40 }
 0x11c   :  { %v341_v25 = vadd.f32 %v327_v22, %v310_v20  ;;  %v312_v26 = vmul.f32 0.6931472, %v2495_v24  ;;  %2209 = vmatprep.mubr.msk.bf16.mxu0 %vm2549_vm0, %v2548_v1 }
 0x11d   :  { %2176 = vmatmul.mubr.msk.bf16.gmra.mxu1 %vm406_vm2, %v363_v19 }
 0x11e   :  { %v342_v29 = vadd.f32 %v328_v27, %v312_v26  ;;  %2179 = vmatprep.mubr.msk.bf16.mxu1 %vm2549_vm0, %v2548_v1  ;;  %v1904_v31 = vadd.f32 -0.6931472, %v341_v25 }
 0x120   :  { %v2497_v30 = vpop.eup %2496  ;;  %v1905_v36 = vadd.f32 -0.6931472, %v342_v29 }
 0x121   :  { %v314_v21 = vmul.f32 0.6931472, %v2497_v30 }
 0x122   :  { %v364_v33 = vpack.c.bf16 %v1905_v36, %v1904_v31 }
 0x123   :  { %2210 = vmatmul.mubr.msk.bf16.gmra.mxu0 %vm751_vm3, %v2801_v32  ;;  %v343_v37 = vadd.f32 %v329_v35, %v314_v21 }
 0x124   :  { %v2499_v49 = vpop.eup %2498  ;;  %2213 = vmatprep.mubr.msk.bf16.mxu0 %vm2549_vm0, %v2548_v1 }
 0x125   :  { %v316_v38 = vmul.f32 0.6931472, %v2499_v49  ;;  %2180 = vmatmul.mubr.msk.bf16.gmra.mxu1 %vm406_vm2, %v364_v33  ;;  %v1906_v2 = vadd.f32 -0.6931472, %v343_v37 }
 0x126   :  { %2183 = vmatprep.mubr.msk.bf16.mxu1 %vm2549_vm0, %v2548_v1 }
 0x127   :  { %v344_v41 = vadd.f32 %v330_v39, %v316_v38 }
 0x129   :  { %v1907_v43 = vadd.f32 -0.6931472, %v344_v41 }
 0x12b   :  { %v365_v44 = vpack.c.bf16 %v1907_v43, %v1906_v2  ;;  %2214 = vmatmul.mubr.msk.bf16.gmra.mxu0 %vm751_vm3, %v2812_v42 }
 0x12c   :  { %2217 = vmatprep.mubr.msk.bf16.mxu0 %vm2549_vm0, %v2548_v1 }
 0x12d   :  { %2184 = vmatmul.mubr.msk.bf16.gmra.mxu1 %vm406_vm2, %v365_v44 }
 0x12e   :  { %2239 = vmatprep.mubr.msk.bf16.mxu1 %vm2549_vm0, %v2548_v1 }
 0x133   :  { %2218 = vmatmul.mubr.msk.bf16.gmra.mxu0 %vm751_vm3, %v2821_v15 }
 0x134   :  { %2221 = vmatprep.mubr.msk.bf16.mxu0 %vm2549_vm0, %v2548_v1 }
 0x13b   :  { %2222 = vmatmul.mubr.msk.bf16.gmra.mxu0 %vm751_vm3, %v2827_v45 }
 0x13c   :  { %2311 = vmatprep.mubr.msk.bf16.mxu0 %vm2549_vm0, %v2548_v1 }
 0x1bc   :  { %v462_v47 = vpop.f32.mrf.mxu1 }
 0x1bd   :  { %v2839_v48 = vadd.f32 %v2836_v46, %v462_v47 }
 0x1be   :  { %v2161_v50 = vpop.f32.mrf.mxu1 }
 0x1bf   :  { %517 = vst.msk [vmem:[#allocation2] sm:$0xff] %vm108_vm1, %v2839_v48 }
 0x1c0   :  { %v465_v51 = vpop.f32.mrf.mxu1 }
 0x1c1   :  { %v2844_v53 = vadd.f32 %v2836_v46, %v465_v51 }
 0x1c2   :  { %v2162_v52 = vpop.f32.mrf.mxu1 }
 0x1c3   :  { %518 = vst.msk [vmem:[#allocation2 + $0x8] sm:$0xff] %vm108_vm1, %v2844_v53 }
 0x1c4   :  { %v470_v54 = vpop.f32.mrf.mxu1 }
 0x1c5   :  { %v2849_v55 = vadd.f32 %v2836_v46, %v470_v54 }
 0x1c6   :  { %v2165_v56 = vpop.f32.mrf.mxu1  ;;  %v862_v63 = vld [vmem:[#allocation2] sm:$0xff] }
 0x1c7   :  { %519 = vst.msk [vmem:[#allocation2 + $0x10] sm:$0xff] %vm108_vm1, %v2849_v55 }
 0x1c8   :  { %v473_v57 = vpop.f32.mrf.mxu1 }
 0x1c9   :  { %v2854_v28 = vadd.f32 %v2836_v46, %v473_v57 }
 0x1ca   :  { %v2166_v58 = vpop.f32.mrf.mxu1  ;;  %v863_v6 = vld [vmem:[#allocation2 + $0x8] sm:$0xff] }
 0x1cb   :  { %520 = vst.msk [vmem:[#allocation2 + $0x18] sm:$0xff] %vm108_vm1, %v2854_v28  ;;  %v807_v59 = vpop.f32.mrf.mxu0 }
 0x1cc   :  { %v2861_v7 = vmul.f32 %v862_v63, %v807_v59 }
 0x1cd   :  { %v478_v61 = vpop.f32.mrf.mxu1  ;;  %v2199_v60 = vpop.f32.mrf.mxu0 }
 0x1ce   :  { %v2859_v62 = vadd.f32 %v2836_v46, %v478_v61 }
 0x1cf   :  { %v2169_v0 = vpop.f32.mrf.mxu1  ;;  %v810_v4 = vpop.f32.mrf.mxu0 }
 0x1d0   :  { %521 = vst.msk [vmem:[#allocation2 + $0x20] sm:$0xff] %vm108_vm1, %v2859_v62  ;;  %v2865_v8 = vmul.f32 %v863_v6, %v810_v4 }
 0x1d1   :  { %v481_v9 = vpop.f32.mrf.mxu1  ;;  %v2200_v10 = vpop.f32.mrf.mxu0 }
 0x1d2   :  { %v890_v5 = vpack.c.bf16 %v2865_v8, %v2861_v7  ;;  %v2870_v34 = vadd.f32 %v2836_v46, %v481_v9 }
 0x1d3   :  { %v2170_v11 = vpop.f32.mrf.mxu1  ;;  %v2872_v12 = vpop.f32.mrf.mxu0 }
 0x1d4   :  { %522 = vst.msk [vmem:[#allocation2 + $0x28] sm:$0xff] %vm108_vm1, %v2870_v34 }
 0x1d5   :  { %v486_v14 = vpop.f32.mrf.mxu1  ;;  %v2203_v16 = vpop.f32.mrf.mxu0 }
 0x1d6   :  { %v2877_v13 = vadd.f32 %v2836_v46, %v486_v14 }
 0x1d7   :  { %v2173_v17 = vpop.f32.mrf.mxu1  ;;  %v2879_v18 = vpop.f32.mrf.mxu0 }
 0x1d8   :  { %523 = vst.msk [vmem:[#allocation2 + $0x30] sm:$0xff] %vm108_vm1, %v2877_v13 }
 0x1d9   :  { %v489_v19 = vpop.f32.mrf.mxu1  ;;  %v2204_v20 = vpop.f32.mrf.mxu0 }
 0x1da   :  { %v2884_v22 = vadd.f32 %v2836_v46, %v489_v19 }
 0x1db   :  { %v2174_v24 = vpop.f32.mrf.mxu1  ;;  %v2886_v25 = vpop.f32.mrf.mxu0 }
 0x1dc   :  { %524 = vst.msk [vmem:[#allocation2 + $0x38] sm:$0xff] %vm108_vm1, %v2884_v22 }
 0x1dd   :  { %v494_v26 = vpop.f32.mrf.mxu1  ;;  %v2207_v27 = vpop.f32.mrf.mxu0 }
 0x1de   :  { %v2891_v29 = vadd.f32 %v2836_v46, %v494_v26 }
 0x1df   :  { %v2177_v30 = vpop.f32.mrf.mxu1  ;;  %v2893_v31 = vpop.f32.mrf.mxu0 }
 0x1e0   :  { %525 = vst.msk [vmem:[#allocation2 + $0x40] sm:$0xff] %vm108_vm1, %v2891_v29 }
 0x1e1   :  { %v497_v36 = vpop.f32.mrf.mxu1  ;;  %v2208_v21 = vpop.f32.mrf.mxu0 }
 0x1e2   :  { %v2898_v33 = vadd.f32 %v2836_v46, %v497_v36 }
 0x1e3   :  { %v2178_v35 = vpop.f32.mrf.mxu1  ;;  %v2900_v49 = vpop.f32.mrf.mxu0 }
 0x1e4   :  { %526 = vst.msk [vmem:[#allocation2 + $0x48] sm:$0xff] %vm108_vm1, %v2898_v33 }
 0x1e5   :  { %v502_v37 = vpop.f32.mrf.mxu1  ;;  %v2211_v38 = vpop.f32.mrf.mxu0 }
 0x1e6   :  { %v2905_v39 = vadd.f32 %v2836_v46, %v502_v37 }
 0x1e7   :  { %v2181_v41 = vpop.f32.mrf.mxu1  ;;  %v834_v2 = vpop.f32.mrf.mxu0  ;;  %v870_v38 = vld [vmem:[#allocation2 + $0x40] sm:$0xff] }
 0x1e8   :  { %527 = vst.msk [vmem:[#allocation2 + $0x50] sm:$0xff] %vm108_vm1, %v2905_v39 }
 0x1e9   :  { %v505_v43 = vpop.f32.mrf.mxu1  ;;  %v2212_v44 = vpop.f32.mrf.mxu0 }
 0x1ea   :  { %v2910_v47 = vadd.f32 %v2836_v46, %v505_v43  ;;  %v869_v43 = vld [vmem:[#allocation2 + $0x38] sm:$0xff] }
 0x1eb   :  { %v2182_v50 = vpop.f32.mrf.mxu1  ;;  %v839_v51 = vpop.f32.mrf.mxu0  ;;  %v871_v21 = vld [vmem:[#allocation2 + $0x48] sm:$0xff]  ;;  %v883_v44 = vmul.f32 %v869_v43, %v834_v2 }
 0x1ec   :  { %528 = vst.msk [vmem:[#allocation2 + $0x58] sm:$0xff] %vm108_vm1, %v2910_v47  ;;  %v884_v41 = vmul.f32 %v870_v38, %v839_v51  ;;  %v1942_v38 = vld [vmem:[%s3252_s5 + $0x2] ss:$0 sm:$0xff] }
 0x1ed   :  { %v510_v52 = vpop.f32.mrf.mxu1  ;;  %v2215_v54 = vpop.f32.mrf.mxu0 }
 0x1ee   :  { %v511_v56 = vadd.f32 %v2836_v46, %v510_v52  ;;  %v868_v52 = vld [vmem:[#allocation2 + $0x30] sm:$0xff] }
 0x1ef   :  { %v2185_v57 = vpop.f32.mrf.mxu1  ;;  %v842_v58 = vpop.f32.mrf.mxu0  ;;  %v872_v30 = vld [vmem:[#allocation2 + $0x50] sm:$0xff]  ;;  %v882_v54 = vmul.f32 %v868_v52, %v2900_v49 }
 0x1f0   :  { %529 = vst.msk [vmem:[#allocation2 + $0x60] sm:$0xff] %vm108_vm1, %v511_v56  ;;  %569 = vrot.lane.b32.xlu1 %v511_v56, %s2550_s29  ;;  %v885_v35 = vmul.f32 %v871_v21, %v842_v58  ;;  %v867_v57 = vld [vmem:[#allocation2 + $0x28] sm:$0xff] }
 0x1f1   :  { %v513_v59 = vpop.f32.mrf.mxu1  ;;  %v2216_v61 = vpop.f32.mrf.mxu0  ;;  %v881_v51 = vmul.f32 %v867_v57, %v2893_v31  ;;  %v893_v58 = vpack.c.bf16 %v883_v44, %v882_v54 }
 0x1f2   :  { %v514_v60 = vadd.f32 %v2836_v46, %v513_v59  ;;  %v894_v50 = vpack.c.bf16 %v885_v35, %v884_v41  ;;  %v866_v59 = vld [vmem:[#allocation2 + $0x20] sm:$0xff]  ;;  %v2430_v35 = vld [vmem:[%s3251_s4 + $0x28] sm:$0xff]  }
 0x1f3   :  { %v2186_v63 = vpop.f32.mrf.mxu1  ;;  %v847_v0 = vpop.f32.mrf.mxu0  ;;  %v873_v24 = vld [vmem:[#allocation2 + $0x58] sm:$0xff]  ;;  %v880_v2 = vmul.f32 %v866_v59, %v2886_v25 }
 0x1f4   :  { %530 = vst.msk [vmem:[#allocation2 + $0x68] sm:$0xff] %vm108_vm1, %v514_v60  ;;  %565 = vrot.lane.b32.xlu1 %v2905_v39, %s2550_s29  ;;  %571 = vrot.lane.b32.xlu0 %v514_v60, %s2550_s29  ;;  %v886_v36 = vmul.f32 %v872_v30, %v847_v0  ;;  %v864_v63 = vld [vmem:[#allocation2 + $0x10] sm:$0xff] }
 0x1f5   :  { %v2219_v4 = vpop.f32.mrf.mxu0  ;;  %v892_v61 = vpack.c.bf16 %v881_v51, %v880_v2  ;;  %v878_v31 = vmul.f32 %v864_v63, %v2872_v12  ;;  %v2977_v12 = vld [vmem:[%s3249_s2] sm:$0xff]  }
 0x1f7   :  { %v850_v6 = vpop.f32.mrf.mxu0  ;;  %v874_v11 = vld [vmem:[#allocation2 + $0x60] sm:$0xff] }
 0x1f8   :  { %561 = vrot.lane.b32.xlu1 %v2891_v29, %s2550_s29  ;;  %567 = vrot.lane.b32.xlu0 %v2910_v47, %s2550_s29  ;;  %v887_v27 = vmul.f32 %v873_v24, %v850_v6 }
 0x1f9   :  { %v2220_v9 = vpop.f32.mrf.mxu0 }
 0x1fa   :  { %v895_v37 = vpack.c.bf16 %v887_v27, %v886_v36 }
 0x1fb   :  { %v855_v10 = vpop.f32.mrf.mxu0  ;;  %v875_v16 = vld [vmem:[#allocation2 + $0x68] sm:$0xff] }
 0x1fc   :  { %557 = vrot.lane.b32.xlu1 %v2877_v13, %s2550_s29  ;;  %563 = vrot.lane.b32.xlu0 %v2898_v33, %s2550_s29  ;;  %v888_v17 = vmul.f32 %v874_v11, %v855_v10 }
 0x1fd   :  { %v2223_v46 = vpop.f32.mrf.mxu0 }
 0x1ff   :  { %v858_v14 = vpop.f32.mrf.mxu0 }
 0x200   :  { %553 = vrot.lane.b32.xlu1 %v2859_v62, %s2550_s29  ;;  %559 = vrot.lane.b32.xlu0 %v2884_v22, %s2550_s29  ;;  %v889_v19 = vmul.f32 %v875_v16, %v858_v14 }
 0x201   :  { %v2224_v20 = vpop.f32.mrf.mxu0 }
 0x202   :  { %v896_v26 = vpack.c.bf16 %v889_v19, %v888_v17 }
 0x204   :  { %549 = vrot.lane.b32.xlu1 %v2849_v55, %s2550_s29  ;;  %555 = vrot.lane.b32.xlu0 %v2870_v34, %s2550_s29 }
 0x205   :  { %2226 = vmatpush3.bf16.msra.mxu1 %v896_v26 }
 0x206   :  { %2227 = vmatprep.subr.bf16.mxu1 %v2548_v1 }
 0x208   :  { %545 = vrot.lane.b32.xlu1 %v2839_v48, %s2550_s29  ;;  %551 = vrot.lane.b32.xlu0 %v2854_v28, %s2550_s29 }
 0x209   :  { %2228 = vmatpush3.bf16.msra.mxu1 %v895_v37  ;;  %v2431_v37 = vld [vmem:[%s3251_s4 + $0x20] sm:$0xff]  }
 0x20a   :  { %2229 = vmatprep.subr.bf16.mxu1 %v2548_v1 }
 0x20c   :  { %626 = vrot.lane.b32.xlu1 %v511_v56, %s2551_s15  ;;  %547 = vrot.lane.b32.xlu0 %v2844_v53, %s2550_s29  ;;  %v865_v56 = vld [vmem:[#allocation2 + $0x18] sm:$0xff] }
 0x20d   :  { %2230 = vmatpush3.bf16.msra.mxu1 %v894_v50  ;;  %v879_v49 = vmul.f32 %v865_v56, %v2879_v18 }
 0x20e   :  { %2231 = vmatprep.subr.bf16.mxu1 %v2548_v1 }
 0x20f   :  { %v891_v25 = vpack.c.bf16 %v879_v49, %v878_v31 }
 0x210   :  { %622 = vrot.lane.b32.xlu1 %v2905_v39, %s2551_s15  ;;  %628 = vrot.lane.b32.xlu0 %v514_v60, %s2551_s15 }
 0x211   :  { %2232 = vmatpush3.bf16.msra.mxu1 %v893_v58 }
 0x212   :  { %2233 = vmatprep.subr.bf16.mxu1 %v2548_v1 }
 0x214   :  { %618 = vrot.lane.b32.xlu1 %v2891_v29, %s2551_s15  ;;  %624 = vrot.lane.b32.xlu0 %v2910_v47, %s2551_s15 }
 0x215   :  { %2234 = vmatpush3.bf16.msra.mxu1 %v892_v61 }
 0x216   :  { %2235 = vmatprep.subr.bf16.mxu1 %v2548_v1 }
 0x218   :  { %614 = vrot.lane.b32.xlu1 %v2877_v13, %s2551_s15  ;;  %620 = vrot.lane.b32.xlu0 %v2898_v33, %s2551_s15 }
 0x219   :  { %2236 = vmatpush3.bf16.msra.mxu1 %v891_v25 }
 0x21a   :  { %2237 = vmatprep.subr.bf16.mxu1 %v2548_v1 }
 0x21c   :  { %610 = vrot.lane.b32.xlu1 %v2859_v62, %s2551_s15  ;;  %616 = vrot.lane.b32.xlu0 %v2884_v22, %s2551_s15 }
 0x21d   :  { %2238 = vmatpush3.bf16.msra.mxu1 %v890_v5 }
 0x21e   :  { %2243 = vmatprep.subr.bf16.mxu1 %v2548_v1 }
 0x220   :  { %606 = vrot.lane.b32.xlu1 %v2849_v55, %s2551_s15  ;;  %612 = vrot.lane.b32.xlu0 %v2870_v34, %s2551_s15  ;;  %v2428_v55 = vld [vmem:[%s3251_s4 + $0x18] sm:$0xff]  }
 0x221   :  { %2240 = vmatmul.mubr.msk.bf16.vlgmr.msra.gmra.mxu1 %vm902_vm4, %v2977_v12 }
 0x222   :  { %2247 = vmatprep.mubr.msk.bf16.mxu1 %vm2549_vm0, %v2548_v1  ;;  %2244 = vmatpush3.bf16.msra.mxu1 %v2428_v55 }
 0x223   :  { %2245 = vmatprep.subr.bf16.mxu1 %v2548_v1 }
 0x224   :  { %602 = vrot.lane.b32.xlu1 %v2839_v48, %s2551_s15  ;;  %608 = vrot.lane.b32.xlu0 %v2854_v28, %s2551_s15  ;;  %v2429_v48 = vld [vmem:[%s3251_s4 + $0x10] sm:$0xff]  }
 0x226   :  { %2246 = vmatpush3.bf16.msra.mxu1 %v2429_v48 }
 0x227   :  { %2251 = vmatprep.subr.bf16.mxu1 %v2548_v1 }
 0x228   :  { %604 = vrot.lane.b32.xlu0 %v2844_v53, %s2551_s15 }
 0x262   :  { %v570_v62 = vpop.permute.xlu1 %569 }
 0x263   :  { %600 = vst.msk [vmem:[#allocation2 + $0xd0] sm:$0xff] %vm108_vm1, %v570_v62 }
 0x266   :  { %v566_v7 = vpop.permute.xlu1 %565  ;;  %v572_v28 = vpop.permute.xlu0 %571 }
 0x267   :  { %598 = vst.msk [vmem:[#allocation2 + $0xc0] sm:$0xff] %vm108_vm1, %v566_v7  ;;  %601 = vst.msk [vmem:[#allocation2 + $0xd8] sm:$0xff] %vm108_vm1, %v572_v28 }
 0x26a   :  { %v562_v53 = vpop.permute.xlu1 %561  ;;  %v568_v8 = vpop.permute.xlu0 %567 }
 0x26b   :  { %596 = vst.msk [vmem:[#allocation2 + $0xb0] sm:$0xff] %vm108_vm1, %v562_v53  ;;  %599 = vst.msk [vmem:[#allocation2 + $0xc8] sm:$0xff] %vm108_vm1, %v568_v8 }
 0x26e   :  { %v558_v5 = vpop.permute.xlu1 %557  ;;  %v564_v34 = vpop.permute.xlu0 %563 }
 0x26f   :  { %594 = vst.msk [vmem:[#allocation2 + $0xa0] sm:$0xff] %vm108_vm1, %v558_v5  ;;  %597 = vst.msk [vmem:[#allocation2 + $0xb8] sm:$0xff] %vm108_vm1, %v564_v34 }
 0x272   :  { %v554_v13 = vpop.permute.xlu1 %553  ;;  %v560_v18 = vpop.permute.xlu0 %559 }
 0x273   :  { %592 = vst.msk [vmem:[#allocation2 + $0x90] sm:$0xff] %vm108_vm1, %v554_v13  ;;  %595 = vst.msk [vmem:[#allocation2 + $0xa8] sm:$0xff] %vm108_vm1, %v560_v18  ;;  %v2432_v18 = vld [vmem:[%s3251_s4 + $0x38] sm:$0xff]  }
 0x276   :  { %v550_v22 = vpop.permute.xlu1 %549  ;;  %v556_v29 = vpop.permute.xlu0 %555 }
 0x277   :  { %590 = vst.msk [vmem:[#allocation2 + $0x80] sm:$0xff] %vm108_vm1, %v550_v22  ;;  %593 = vst.msk [vmem:[#allocation2 + $0x98] sm:$0xff] %vm108_vm1, %v556_v29  ;;  %v2433_v22 = vld [vmem:[%s3251_s4 + $0x30] sm:$0xff]   ;;  %v1948_v29 = vld [vmem:[%s3252_s5 + $0x5] ss:$0 sm:$0xff] }
 0x27a   :  { %v546_v33 = vpop.permute.xlu1 %545  ;;  %v552_v39 = vpop.permute.xlu0 %551 }
 0x27b   :  { %588 = vst.msk [vmem:[#allocation2 + $0x70] sm:$0xff] %vm108_vm1, %v546_v33  ;;  %591 = vst.msk [vmem:[#allocation2 + $0x88] sm:$0xff] %vm108_vm1, %v552_v39 }
 0x27e   :  { %v627_v47 = vpop.permute.xlu1 %626  ;;  %v548_v60 = vpop.permute.xlu0 %547 }
 0x27f   :  { %657 = vst.msk [vmem:[#allocation2 + $0x140] sm:$0xff] %vm108_vm1, %v627_v47  ;;  %589 = vst.msk [vmem:[#allocation2 + $0x78] sm:$0xff] %vm108_vm1, %v548_v60 }
 0x282   :  { %v623_v0 = vpop.permute.xlu1 %622  ;;  %v629_v4 = vpop.permute.xlu0 %628 }
 0x283   :  { %655 = vst.msk [vmem:[#allocation2 + $0x130] sm:$0xff] %vm108_vm1, %v623_v0  ;;  %658 = vst.msk [vmem:[#allocation2 + $0x148] sm:$0xff] %vm108_vm1, %v629_v4 }
 0x286   :  { %v619_v6 = vpop.permute.xlu1 %618  ;;  %v625_v9 = vpop.permute.xlu0 %624 }
 0x287   :  { %653 = vst.msk [vmem:[#allocation2 + $0x120] sm:$0xff] %vm108_vm1, %v619_v6  ;;  %656 = vst.msk [vmem:[#allocation2 + $0x138] sm:$0xff] %vm108_vm1, %v625_v9  ;;  %v2524_v6 = vld [vmem:[%s3247_s0] sm:$0xff] }
 0x28a   :  { %v615_v10 = vpop.permute.xlu1 %614  ;;  %v621_v46 = vpop.permute.xlu0 %620 }
 0x28b   :  { %651 = vst.msk [vmem:[#allocation2 + $0x110] sm:$0xff] %vm108_vm1, %v615_v10  ;;  %654 = vst.msk [vmem:[#allocation2 + $0x128] sm:$0xff] %vm108_vm1, %v621_v46  ;;  %v2525_v10 = vld [vmem:[%s3247_s0 + $0x8] sm:$0xff]  ;;  %s1866_s0 = sshll.u32 %s2552_s11, 4  ;;  %s1867_s0 = int_to_ptr.vmem [resolvable:$true] %s1866_s0 }
 0x28c   :  { %s2526_s12 = scalar_lea.vmem %s1867_s0, 256  ;;  %p2531_p1 = scmp.lt.s32.totalorder %s1867_s0, %s1867_s0 }
 0x28d   :  { %p2527_p0 = scmp.ne.s32.totalorder %s1867_s0, %s2526_s12  ;;  %p2532_p2 = scmp.lt.s32.totalorder %s2526_s12, %s2526_s12 }
 0x28e   :  { %v611_v11 = vpop.permute.xlu1 %610  ;;  %v617_v14 = vpop.permute.xlu0 %616 }
 0x28f   :  { %649 = vst.msk [vmem:[#allocation2 + $0x100] sm:$0xff] %vm108_vm1, %v611_v11  ;;  %652 = vst.msk [vmem:[#allocation2 + $0x118] sm:$0xff] %vm108_vm1, %v617_v14  ;;  %p2533_p3 = por %p2532_p2, %p2531_p1 }
 0x291   :  { %p2534_p4 = pnand %p2533_p3, %p2527_p0 }
 0x292   :  { %v607_v16 = vpop.permute.xlu1 %606  ;;  %v613_v17 = vpop.permute.xlu0 %612 }
 0x293   :  { %647 = vst.msk [vmem:[#allocation2 + $0xf0] sm:$0xff] %vm108_vm1, %v607_v16  ;;  %650 = vst.msk [vmem:[#allocation2 + $0x108] sm:$0xff] %vm108_vm1, %v613_v17 }
 0x296   :  { %v603_v19 = vpop.permute.xlu1 %602  ;;  %v609_v20 = vpop.permute.xlu0 %608 }
 0x297   :  { %645 = vst.msk [vmem:[#allocation2 + $0xe0] sm:$0xff] %vm108_vm1, %v603_v19  ;;  %648 = vst.msk [vmem:[#allocation2 + $0xf8] sm:$0xff] %vm108_vm1, %v609_v20 }
 0x29a   :  { %v605_v24 = vpop.permute.xlu0 %604 }
 0x29b   :  { %646 = vst.msk [vmem:[#allocation2 + $0xe8] sm:$0xff] %vm108_vm1, %v605_v24 }
 0x2e1   :  { %v940_v26 = vpop.f32.mrf.mxu1 }
 0x2e3   :  { %v2241_v27 = vpop.f32.mrf.mxu1 }
 0x2e4   :  { %v1255_v27 = vld [vmem:[#allocation2 + $0x70] sm:$0xff] }
 0x2e5   :  { %v943_v30 = vpop.f32.mrf.mxu1 }
 0x2e6   :  { %v947_v36 = vpack.c.bf16 %v943_v30, %v940_v26 }
 0x2e7   :  { %v2242_v21 = vpop.f32.mrf.mxu1 }
 0x2e8   :  { %2248 = vmatmul.mubr.msk.bf16.vlgmr.msra.gmra.mxu1 %vm108_vm1, %v947_v36  ;;  %v1256_v36 = vld [vmem:[#allocation2 + $0x78] sm:$0xff] }
 0x2e9   :  { %2255 = vmatprep.mubr.msk.bf16.mxu1 %vm2549_vm0, %v2548_v1  ;;  %2252 = vmatpush3.bf16.msra.mxu1 %v2430_v35 }
 0x2ea   :  { %2253 = vmatprep.subr.bf16.mxu1 %v2548_v1 }
 0x2ed   :  { %2254 = vmatpush3.bf16.msra.mxu1 %v2431_v37 }
 0x2ee   :  { %2259 = vmatprep.subr.bf16.mxu1 %v2548_v1 }
 0x3a8   :  { %v1001_v41 = vpop.f32.mrf.mxu1 }
 0x3a9   :  { %v1002_v43 = vadd.f32 %v1942_v38, %v1001_v41 }
 0x3aa   :  { %v2249_v44 = vpop.f32.mrf.mxu1 }
 0x3ab   :  { %v1008_v50 = vand.u32 2147483647, %v1002_v43  ;;  %v1022_v62 = vmax.f32 %v1002_v43, 0.0 }
 0x3ac   :  { %v1004_v52 = vpop.f32.mrf.mxu1 }
 0x3ad   :  { %v1010_v54 = vsub.f32 0.0, %v1008_v50  ;;  %v1005_v57 = vadd.f32 %v1942_v38, %v1004_v52 }
 0x3ae   :  { %v2250_v51 = vpop.f32.mrf.mxu1 }
 0x3af   :  { %v1012_v58 = vmul.f32 1.442695, %v1010_v54  ;;  %v1009_v59 = vand.u32 2147483647, %v1005_v57  ;;  %v1023_v53 = vmax.f32 %v1005_v57, 0.0 }
 0x3b1   :  { %2500 = vpow2.f32 %v1012_v58  ;;  %v1011_v2 = vsub.f32 0.0, %v1009_v59 }
 0x3b3   :  { %v1014_v56 = vmul.f32 1.442695, %v1011_v2 }
 0x3b5   :  { %2502 = vpow2.f32 %v1014_v56 }
 0x3be   :  { %v2501_v49 = vpop.eup %2500 }
 0x3bf   :  { %v1016_v61 = vadd.f32 1.0, %v2501_v49 }
 0x3c1   :  { %2504 = vlog2.f32 %v1016_v61 }
 0x3c2   :  { %v2503_v63 = vpop.eup %2502 }
 0x3c3   :  { %v1017_v31 = vadd.f32 1.0, %v2503_v63 }
 0x3c5   :  { %2506 = vlog2.f32 %v1017_v31 }
 0x3ce   :  { %v2505_v25 = vpop.eup %2504 }
 0x3cf   :  { %v1019_v55 = vmul.f32 0.6931472, %v2505_v25 }
 0x3d1   :  { %v1024_v7 = vadd.f32 %v1022_v62, %v1019_v55 }
 0x3d2   :  { %v2507_v48 = vpop.eup %2506 }
 0x3d3   :  { %v1021_v28 = vmul.f32 0.6931472, %v2507_v48  ;;  %v1946_v5 = vadd.f32 -0.6931472, %v1024_v7 }
 0x3d5   :  { %v1025_v8 = vadd.f32 %v1023_v53, %v1021_v28  ;;  %v1267_v53 = vld [vmem:[#allocation2 + $0xd0] sm:$0xff] }
 0x3d7   :  { %v1947_v34 = vadd.f32 -0.6931472, %v1025_v8 }
 0x3d9   :  { %v1028_v13 = vpack.c.bf16 %v1947_v34, %v1946_v5  ;;  %v1268_v5 = vld [vmem:[#allocation2 + $0xd8] sm:$0xff] }
 0x3db   :  { %2256 = vmatmul.mubr.msk.bf16.vlgmr.msra.gmra.mxu1 %vm108_vm1, %v1028_v13 }
 0x3dc   :  { %2263 = vmatprep.mubr.msk.bf16.mxu1 %vm2549_vm0, %v2548_v1  ;;  %2260 = vmatpush3.bf16.msra.mxu1 %v2432_v18  ;;  %v1266_v18 = vld [vmem:[#allocation2 + $0xc8] sm:$0xff] }
 0x3dd   :  { %2261 = vmatprep.subr.bf16.mxu1 %v2548_v1 }
 0x3e0   :  { %2262 = vmatpush3.bf16.msra.mxu1 %v2433_v22 }
 0x3e1   :  { %2267 = vmatprep.subr.bf16.mxu1 %v2548_v1 }
 0x49b   :  { %v1082_v33 = vpop.f32.mrf.mxu1 }
 0x49c   :  { %v1083_v47 = vadd.f32 %v1948_v29, %v1082_v33 }
 0x49d   :  { %v2257_v39 = vpop.f32.mrf.mxu1 }
 0x49e   :  { %v3061_v9 = vadd.f32 %v2524_v6, %v1083_v47  ;;  %v1265_v39 = vld [vmem:[#allocation2 + $0xc0] sm:$0xff]  ;;  %v1263_v6 = vld [vmem:[#allocation2 + $0xb0] sm:$0xff] }
 0x49f   :  { %v1085_v60 = vpop.f32.mrf.mxu1 }
 0x4a0   :  { %v1086_v0 = vadd.f32 %v1948_v29, %v1085_v60  ;;  %v1264_v60 = vld [vmem:[#allocation2 + $0xb8] sm:$0xff] }
 0x4a1   :  { %v2258_v4 = vpop.f32.mrf.mxu1 }
 0x4a2   :  { %v3066_v46 = vadd.f32 %v2525_v10, %v1086_v0 }
 0x4a4   :  { %v1108_v11 = vpack.c.bf16 %v3066_v46, %v3061_v9 }
 0x4a6   :  { %2264 = vmatmul.mubr.msk.bf16.vlgmr.msra.gmra.mxu1 %vm108_vm1, %v1108_v11  ;;  %v1262_v11 = vld [vmem:[#allocation2 + $0xa8] sm:$0xff] }
 0x4a7   :  { %2269 = vmatprep.mubr.msk.bf16.mxu1 %vm2549_vm0, %v2548_v1 }
 0x566   :  { %v1158_v14 = vpop.f32.mrf.mxu1 }
 0x568   :  { %v2265_v16 = vpop.f32.mrf.mxu1 }
 0x56a   :  { %v1161_v17 = vpop.f32.mrf.mxu1 }
 0x56b   :  { %v1165_v19 = vpack.c.bf16 %v1161_v17, %v1158_v14  ;;  %v1261_v17 = vld [vmem:[#allocation2 + $0xa0] sm:$0xff] }
 0x56c   :  { %v2266_v20 = vpop.f32.mrf.mxu1 }
 0x56d   :  { %2268 = vmatpush3.bf16.msra.mxu1 %v1165_v19  ;;  %v1260_v20 = vld [vmem:[#allocation2 + $0x98] sm:$0xff] }
 0x56e   :  { %2369 = vmatprep.subr.bf16.mxu1 %v2548_v1 }
 0x570   :  { %2270 = vmatmul.mubr.msk.bf16.vlgmr.msra.gmra.mxu1 %vm751_vm3, %v2767_v23 }
 0x571   :  { %2273 = vmatprep.mubr.msk.bf16.mxu1 %vm2549_vm0, %v2548_v1 }
 0x578   :  { %2274 = vmatmul.mubr.msk.bf16.gmra.mxu1 %vm751_vm3, %v2779_v3 }
 0x579   :  { %2277 = vmatprep.mubr.msk.bf16.mxu1 %vm2549_vm0, %v2548_v1 }
 0x580   :  { %2278 = vmatmul.mubr.msk.bf16.gmra.mxu1 %vm751_vm3, %v2790_v40 }
 0x581   :  { %2281 = vmatprep.mubr.msk.bf16.mxu1 %vm2549_vm0, %v2548_v1 }
 0x588   :  { %2282 = vmatmul.mubr.msk.bf16.gmra.mxu1 %vm751_vm3, %v2801_v32 }
 0x589   :  { %2285 = vmatprep.mubr.msk.bf16.mxu1 %vm2549_vm0, %v2548_v1 }
 0x590   :  { %2286 = vmatmul.mubr.msk.bf16.gmra.mxu1 %vm751_vm3, %v2812_v42 }
 0x591   :  { %2289 = vmatprep.mubr.msk.bf16.mxu1 %vm2549_vm0, %v2548_v1 }
 0x598   :  { %2290 = vmatmul.mubr.msk.bf16.gmra.mxu1 %vm751_vm3, %v2821_v15 }
 0x599   :  { %2293 = vmatprep.mubr.msk.bf16.mxu1 %vm2549_vm0, %v2548_v1 }
 0x5a0   :  { %2294 = vmatmul.mubr.msk.bf16.gmra.mxu1 %vm751_vm3, %v2827_v45 }
 0x5a1   :  { %2383 = vmatprep.mubr.msk.bf16.mxu1 %vm2549_vm0, %v2548_v1 }
 0x630   :  { %v1200_v24 = vpop.f32.mrf.mxu1 }
 0x631   :  { %v3102_v21 = vmul.f32 %v1255_v27, %v1200_v24  ;;  %v1259_v27 = vld [vmem:[#allocation2 + $0x90] sm:$0xff] }
 0x632   :  { %v2271_v26 = vpop.f32.mrf.mxu1 }
 0x634   :  { %v1203_v30 = vpop.f32.mrf.mxu1 }
 0x635   :  { %v3104_v35 = vmul.f32 %v1256_v36, %v1203_v30  ;;  %v1258_v36 = vld [vmem:[#allocation2 + $0x88] sm:$0xff] }
 0x636   :  { %v2272_v37 = vpop.f32.mrf.mxu1 }
 0x637   :  { %v1283_v38 = vpack.c.bf16 %v3104_v35, %v3102_v21  ;;  %v2435_v21 = vld [vmem:[%s3251_s4 + $0x40] sm:$0xff]  }
 0x638   :  { %v1208_v41 = vpop.f32.mrf.mxu1 }
 0x63a   :  { %v2275_v43 = vpop.f32.mrf.mxu1 }
 0x63c   :  { %v1211_v44 = vpop.f32.mrf.mxu1 }
 0x63d   :  { %v1272_v37 = vmul.f32 %v1258_v36, %v1211_v44 }
 0x63e   :  { %v2276_v50 = vpop.f32.mrf.mxu1 }
 0x63f   :  { %v1257_v50 = vld [vmem:[#allocation2 + $0x80] sm:$0xff] }
 0x640   :  { %v1216_v52 = vpop.f32.mrf.mxu1 }
 0x641   :  { %v1273_v30 = vmul.f32 %v1259_v27, %v1216_v52 }
 0x642   :  { %v2279_v54 = vpop.f32.mrf.mxu1 }
 0x643   :  { %v1271_v54 = vmul.f32 %v1257_v50, %v1208_v41  ;;  %v2434_v41 = vld [vmem:[%s3251_s4 + $0x48] sm:$0xff]  }
 0x644   :  { %v1219_v57 = vpop.f32.mrf.mxu1 }
 0x645   :  { %v1274_v24 = vmul.f32 %v1260_v20, %v1219_v57 }
 0x646   :  { %v2280_v51 = vpop.f32.mrf.mxu1 }
 0x647   :  { %v1285_v43 = vpack.c.bf16 %v1274_v24, %v1273_v30  ;;  %v1284_v51 = vpack.c.bf16 %v1272_v37, %v1271_v54 }
 0x648   :  { %v1224_v58 = vpop.f32.mrf.mxu1 }
 0x649   :  { %v1275_v19 = vmul.f32 %v1261_v17, %v1224_v58  ;;  %v2436_v58 = vld [vmem:[%s3251_s4 + $0x58] sm:$0xff]  }
 0x64a   :  { %v2283_v59 = vpop.f32.mrf.mxu1 }
 0x64b   :  { %v2437_v59 = vld [vmem:[%s3251_s4 + $0x50] sm:$0xff]  }
 0x64c   :  { %v1227_v2 = vpop.f32.mrf.mxu1 }
 0x64d   :  { %v1276_v14 = vmul.f32 %v1262_v11, %v1227_v2  ;;  %v1975_v2 = vld [vmem:[%s3252_s5 + $0x3] ss:$0 sm:$0xff]  ;;  %v2438_v11 = vld [vmem:[%s3251_s4 + $0x68] sm:$0xff]  }
 0x64e   :  { %v2284_v56 = vpop.f32.mrf.mxu1 }
 0x64f   :  { %v1286_v26 = vpack.c.bf16 %v1276_v14, %v1275_v19  ;;  %v2439_v14 = vld [vmem:[%s3251_s4 + $0x60] sm:$0xff]  }
 0x650   :  { %v1232_v49 = vpop.f32.mrf.mxu1 }
 0x651   :  { %v1277_v10 = vmul.f32 %v1263_v6, %v1232_v49 }
 0x652   :  { %v2287_v61 = vpop.f32.mrf.mxu1 }
 0x654   :  { %v1235_v63 = vpop.f32.mrf.mxu1 }
 0x655   :  { %v1278_v0 = vmul.f32 %v1264_v60, %v1235_v63 }
 0x656   :  { %v2288_v31 = vpop.f32.mrf.mxu1 }
 0x657   :  { %v1287_v16 = vpack.c.bf16 %v1278_v0, %v1277_v10 }
 0x658   :  { %v1240_v25 = vpop.f32.mrf.mxu1 }
 0x659   :  { %v1279_v47 = vmul.f32 %v1265_v39, %v1240_v25 }
 0x65a   :  { %v2291_v55 = vpop.f32.mrf.mxu1 }
 0x65c   :  { %v1243_v62 = vpop.f32.mrf.mxu1 }
 0x65d   :  { %v1280_v29 = vmul.f32 %v1266_v18, %v1243_v62 }
 0x65e   :  { %v2292_v48 = vpop.f32.mrf.mxu1 }
 0x65f   :  { %v1288_v4 = vpack.c.bf16 %v1280_v29, %v1279_v47 }
 0x660   :  { %v1248_v7 = vpop.f32.mrf.mxu1 }
 0x661   :  { %v1281_v34 = vmul.f32 %v1267_v53, %v1248_v7 }
 0x662   :  { %v2295_v28 = vpop.f32.mrf.mxu1 }
 0x664   :  { %v1251_v8 = vpop.f32.mrf.mxu1 }
 0x665   :  { %v1282_v13 = vmul.f32 %v1268_v5, %v1251_v8 }
 0x666   :  { %v2296_v22 = vpop.f32.mrf.mxu1 }
 0x667   :  { %v1289_v33 = vpack.c.bf16 %v1282_v13, %v1281_v34 }
 0x669   :  { %2298 = vmatpush3.bf16.msra.mxu0 %v1289_v33 }
 0x66a   :  { %2299 = vmatprep.subr.bf16.mxu0 %v2548_v1 }
 0x66d   :  { %2300 = vmatpush3.bf16.msra.mxu0 %v1288_v4 }
 0x66e   :  { %2301 = vmatprep.subr.bf16.mxu0 %v2548_v1 }
 0x671   :  { %2302 = vmatpush3.bf16.msra.mxu0 %v1287_v16  ;;  %v1981_v16 = vld [vmem:[%s3252_s5 + $0x6] ss:$0 sm:$0xff] }
 0x672   :  { %2303 = vmatprep.subr.bf16.mxu0 %v2548_v1 }
 0x675   :  { %2304 = vmatpush3.bf16.msra.mxu0 %v1286_v26 }
 0x676   :  { %2305 = vmatprep.subr.bf16.mxu0 %v2548_v1 }
 0x679   :  { %2306 = vmatpush3.bf16.msra.mxu0 %v1285_v43 }
 0x67a   :  { %2307 = vmatprep.subr.bf16.mxu0 %v2548_v1 }
 0x67d   :  { %2308 = vmatpush3.bf16.msra.mxu0 %v1284_v51 }
 0x67e   :  { %2309 = vmatprep.subr.bf16.mxu0 %v2548_v1 }
 0x681   :  { %2310 = vmatpush3.bf16.msra.mxu0 %v1283_v38 }
 0x682   :  { %2315 = vmatprep.subr.bf16.mxu0 %v2548_v1 }
 0x684   :  { %2312 = vmatmul.mubr.msk.bf16.vlgmr.msra.gmra.mxu0 %vm902_vm4, %v2977_v12 }
 0x685   :  { %2319 = vmatprep.mubr.msk.bf16.mxu0 %vm2549_vm0, %v2548_v1  ;;  %2316 = vmatpush3.bf16.msra.mxu0 %v2434_v41 }
 0x686   :  { %2317 = vmatprep.subr.bf16.mxu0 %v2548_v1 }
 0x689   :  { %2318 = vmatpush3.bf16.msra.mxu0 %v2435_v21 }
 0x68a   :  { %2323 = vmatprep.subr.bf16.mxu0 %v2548_v1 }
 0x744   :  { %v1324_v35 = vpop.f32.mrf.mxu0 }
 0x746   :  { %v2313_v38 = vpop.f32.mrf.mxu0 }
 0x748   :  { %v1327_v44 = vpop.f32.mrf.mxu0 }
 0x749   :  { %v1331_v52 = vpack.c.bf16 %v1327_v44, %v1324_v35 }
 0x74a   :  { %v2314_v57 = vpop.f32.mrf.mxu0 }
 0x74b   :  { %2320 = vmatmul.mubr.msk.bf16.vlgmr.msra.gmra.mxu0 %vm108_vm1, %v1331_v52 }
 0x74c   :  { %2327 = vmatprep.mubr.msk.bf16.mxu0 %vm2549_vm0, %v2548_v1  ;;  %2324 = vmatpush3.bf16.msra.mxu0 %v2436_v58 }
 0x74d   :  { %2325 = vmatprep.subr.bf16.mxu0 %v2548_v1 }
 0x750   :  { %2326 = vmatpush3.bf16.msra.mxu0 %v2437_v59 }
 0x751   :  { %2331 = vmatprep.subr.bf16.mxu0 %v2548_v1 }
 0x80b   :  { %v1385_v56 = vpop.f32.mrf.mxu0 }
 0x80c   :  { %v1386_v49 = vadd.f32 %v1975_v2, %v1385_v56 }
 0x80d   :  { %v2321_v61 = vpop.f32.mrf.mxu0 }
 0x80e   :  { %v1392_v63 = vand.u32 2147483647, %v1386_v49  ;;  %v1406_v29 = vmax.f32 %v1386_v49, 0.0 }
 0x80f   :  { %v1388_v31 = vpop.f32.mrf.mxu0 }
 0x810   :  { %v1394_v25 = vsub.f32 0.0, %v1392_v63  ;;  %v1389_v55 = vadd.f32 %v1975_v2, %v1388_v31 }
 0x811   :  { %v2322_v62 = vpop.f32.mrf.mxu0 }
 0x812   :  { %v1396_v48 = vmul.f32 1.442695, %v1394_v25  ;;  %v1393_v7 = vand.u32 2147483647, %v1389_v55  ;;  %v1407_v60 = vmax.f32 %v1389_v55, 0.0 }
 0x814   :  { %2508 = vpow2.f32 %v1396_v48  ;;  %v1395_v28 = vsub.f32 0.0, %v1393_v7 }
 0x816   :  { %v1398_v53 = vmul.f32 1.442695, %v1395_v28 }
 0x818   :  { %2510 = vpow2.f32 %v1398_v53 }
 0x821   :  { %v2509_v8 = vpop.eup %2508 }
 0x822   :  { %v1400_v5 = vadd.f32 1.0, %v2509_v8 }
 0x824   :  { %2512 = vlog2.f32 %v1400_v5  ;;  %v1651_v5 = vld [vmem:[#allocation2 + $0x140] sm:$0xff] }
 0x825   :  { %v2511_v34 = vpop.eup %2510 }
 0x826   :  { %v1401_v13 = vadd.f32 1.0, %v2511_v34 }
 0x828   :  { %2514 = vlog2.f32 %v1401_v13  ;;  %v1652_v13 = vld [vmem:[#allocation2 + $0x148] sm:$0xff] }
 0x831   :  { %v2513_v18 = vpop.eup %2512 }
 0x832   :  { %v1403_v22 = vmul.f32 0.6931472, %v2513_v18 }
 0x834   :  { %v1408_v39 = vadd.f32 %v1406_v29, %v1403_v22  ;;  %v1650_v29 = vld [vmem:[#allocation2 + $0x138] sm:$0xff] }
 0x835   :  { %v2515_v33 = vpop.eup %2514 }
 0x836   :  { %v1405_v47 = vmul.f32 0.6931472, %v2515_v33  ;;  %v1979_v4 = vadd.f32 -0.6931472, %v1408_v39 }
 0x838   :  { %v1409_v0 = vadd.f32 %v1407_v60, %v1405_v47  ;;  %v1649_v60 = vld [vmem:[#allocation2 + $0x130] sm:$0xff] }
 0x83a   :  { %v1980_v6 = vadd.f32 -0.6931472, %v1409_v0 }
 0x83c   :  { %v1412_v10 = vpack.c.bf16 %v1980_v6, %v1979_v4  ;;  %v1648_v4 = vld [vmem:[#allocation2 + $0x128] sm:$0xff] }
 0x83e   :  { %2328 = vmatmul.mubr.msk.bf16.vlgmr.msra.gmra.mxu0 %vm108_vm1, %v1412_v10 }
 0x83f   :  { %2335 = vmatprep.mubr.msk.bf16.mxu0 %vm2549_vm0, %v2548_v1  ;;  %2332 = vmatpush3.bf16.msra.mxu0 %v2438_v11  ;;  %v1647_v11 = vld [vmem:[#allocation2 + $0x120] sm:$0xff] }
 0x840   :  { %2333 = vmatprep.subr.bf16.mxu0 %v2548_v1 }
 0x843   :  { %2334 = vmatpush3.bf16.msra.mxu0 %v2439_v14 }
 0x844   :  { %2339 = vmatprep.subr.bf16.mxu0 %v2548_v1 }
 0x8fe   :  { %v1466_v17 = vpop.f32.mrf.mxu0 }
 0x8ff   :  { %v1467_v20 = vadd.f32 %v1981_v16, %v1466_v17 }
 0x900   :  { %v2329_v19 = vpop.f32.mrf.mxu0 }
 0x901   :  { %v3159_v30 = vadd.f32 %v1467_v20, %v3061_v9  ;;  %v1640_v9 = vld [vmem:[#allocation2 + $0xe8] sm:$0xff]  ;;  %v1645_v20 = vld [vmem:[#allocation2 + $0x110] sm:$0xff] }
 0x902   :  { %v1469_v24 = vpop.f32.mrf.mxu0 }
 0x903   :  { %v1470_v26 = vadd.f32 %v1981_v16, %v1469_v24  ;;  %v1646_v16 = vld [vmem:[#allocation2 + $0x118] sm:$0xff] }
 0x904   :  { %v2330_v27 = vpop.f32.mrf.mxu0 }
 0x905   :  { %v3162_v36 = vadd.f32 %v1470_v26, %v3066_v46  ;;  %v1644_v26 = vld [vmem:[#allocation2 + $0x108] sm:$0xff] }
 0x907   :  { %v1492_v37 = vpack.c.bf16 %v3162_v36, %v3159_v30 }
 0x909   :  { %2336 = vmatmul.mubr.msk.bf16.vlgmr.msra.gmra.mxu0 %vm108_vm1, %v1492_v37 }
 0x90a   :  { %2341 = vmatprep.mubr.msk.bf16.mxu0 %vm2549_vm0, %v2548_v1 }
 0x9c9   :  { %v1542_v43 = vpop.f32.mrf.mxu0 }
 0x9cb   :  { %v2337_v50 = vpop.f32.mrf.mxu0 }
 0x9cd   :  { %v1545_v54 = vpop.f32.mrf.mxu0 }
 0x9ce   :  { %v1549_v51 = vpack.c.bf16 %v1545_v54, %v1542_v43  ;;  %v1643_v43 = vld [vmem:[#allocation2 + $0x100] sm:$0xff]  ;;  %v1642_v54 = vld [vmem:[#allocation2 + $0xf8] sm:$0xff] }
 0x9cf   :  { %v2338_v41 = vpop.f32.mrf.mxu0 }
 0x9d0   :  { %2340 = vmatpush3.bf16.msra.mxu0 %v1549_v51 }
 0x9d3   :  { %2342 = vmatmul.mubr.msk.bf16.vlgmr.msra.gmra.mxu0 %vm751_vm3, %v2767_v23 }
 0x9d4   :  { %2345 = vmatprep.mubr.msk.bf16.mxu0 %vm2549_vm0, %v2548_v1 }
 0x9db   :  { %2346 = vmatmul.mubr.msk.bf16.gmra.mxu0 %vm751_vm3, %v2779_v3 }
 0x9dc   :  { %2349 = vmatprep.mubr.msk.bf16.mxu0 %vm2549_vm0, %v2548_v1 }
 0x9e3   :  { %2350 = vmatmul.mubr.msk.bf16.gmra.mxu0 %vm751_vm3, %v2790_v40  ;;  %v1639_v40 = vld [vmem:[#allocation2 + $0xe0] sm:$0xff] }
 0x9e4   :  { %2353 = vmatprep.mubr.msk.bf16.mxu0 %vm2549_vm0, %v2548_v1 }
 0x9eb   :  { %2354 = vmatmul.mubr.msk.bf16.gmra.mxu0 %vm751_vm3, %v2801_v32 }
 0x9ec   :  { %2357 = vmatprep.mubr.msk.bf16.mxu0 %vm2549_vm0, %v2548_v1 }
 0x9f3   :  { %2358 = vmatmul.mubr.msk.bf16.gmra.mxu0 %vm751_vm3, %v2812_v42 }
 0x9f4   :  { %2361 = vmatprep.mubr.msk.bf16.mxu0 %vm2549_vm0, %v2548_v1 }
 0x9fb   :  { %2362 = vmatmul.mubr.msk.bf16.gmra.mxu0 %vm751_vm3, %v2821_v15 }
 0x9fc   :  { %2365 = vmatprep.mubr.msk.bf16.mxu0 %vm2549_vm0, %v2548_v1 }
 0xa03   :  { %2366 = vmatmul.mubr.msk.bf16.gmra.mxu0 %vm751_vm3, %v2827_v45 }
 0xa93   :  { %v1584_v23 = vpop.f32.mrf.mxu0 }
 0xa94   :  { %v3195_v46 = vmul.f32 %v1639_v40, %v1584_v23  ;;  %v1641_v23 = vld [vmem:[#allocation2 + $0xf0] sm:$0xff] }
 0xa95   :  { %v2343_v3 = vpop.f32.mrf.mxu0 }
 0xa97   :  { %v1587_v32 = vpop.f32.mrf.mxu0 }
 0xa98   :  { %v3197_v42 = vmul.f32 %v1640_v9, %v1587_v32  ;;  %v2440_v32 = vld [vmem:[%s3251_s4 + $0x78] sm:$0xff]   ;;  %v2441_v9 = vld [vmem:[%s3251_s4 + $0x70] sm:$0xff]  }
 0xa99   :  { %v2344_v21 = vpop.f32.mrf.mxu0 }
 0xa9a   :  { %v1667_v35 = vpack.c.bf16 %v3197_v42, %v3195_v46 }
 0xa9b   :  { %v1592_v15 = vpop.f32.mrf.mxu0 }
 0xa9c   :  { %v1655_v3 = vmul.f32 %v1641_v23, %v1592_v15  ;;  %v2442_v15 = vld [vmem:[%s3251_s4 + $0x88] sm:$0xff]  }
 0xa9d   :  { %v2347_v38 = vpop.f32.mrf.mxu0 }
 0xa9e   :  { %v2443_v38 = vld [vmem:[%s3251_s4 + $0x80] sm:$0xff]  }
 0xa9f   :  { %v1595_v44 = vpop.f32.mrf.mxu0 }
 0xaa0   :  { %v1656_v51 = vmul.f32 %v1642_v54, %v1595_v44  ;;  %v2008_v44 = vld [vmem:[%s3252_s5 + $0x4] ss:$0 sm:$0xff] }
 0xaa1   :  { %v2348_v52 = vpop.f32.mrf.mxu0 }
 0xaa2   :  { %v1668_v40 = vpack.c.bf16 %v1656_v51, %v1655_v3 }
 0xaa3   :  { %v1600_v57 = vpop.f32.mrf.mxu0 }
 0xaa4   :  { %v1657_v50 = vmul.f32 %v1643_v43, %v1600_v57 }
 0xaa5   :  { %v2351_v58 = vpop.f32.mrf.mxu0 }
 0xaa7   :  { %v1603_v45 = vpop.f32.mrf.mxu0 }
 0xaa8   :  { %v1658_v27 = vmul.f32 %v1644_v26, %v1603_v45 }
 0xaa9   :  { %v2352_v59 = vpop.f32.mrf.mxu0 }
 0xaaa   :  { %v1669_v41 = vpack.c.bf16 %v1658_v27, %v1657_v50 }
 0xaab   :  { %v1608_v2 = vpop.f32.mrf.mxu0 }
 0xaac   :  { %v1659_v24 = vmul.f32 %v1645_v20, %v1608_v2 }
 0xaad   :  { %v2355_v56 = vpop.f32.mrf.mxu0 }
 0xaaf   :  { %v1611_v49 = vpop.f32.mrf.mxu0 }
 0xab0   :  { %v1660_v17 = vmul.f32 %v1646_v16, %v1611_v49 }
 0xab1   :  { %v2356_v61 = vpop.f32.mrf.mxu0 }
 0xab2   :  { %v1670_v37 = vpack.c.bf16 %v1660_v17, %v1659_v24 }
 0xab3   :  { %v1616_v63 = vpop.f32.mrf.mxu0 }
 0xab4   :  { %v1661_v14 = vmul.f32 %v1647_v11, %v1616_v63 }
 0xab5   :  { %v2359_v31 = vpop.f32.mrf.mxu0 }
 0xab7   :  { %v1619_v25 = vpop.f32.mrf.mxu0 }
 0xab8   :  { %v1662_v6 = vmul.f32 %v1648_v4, %v1619_v25 }
 0xab9   :  { %v2360_v55 = vpop.f32.mrf.mxu0 }
 0xaba   :  { %v1671_v19 = vpack.c.bf16 %v1662_v6, %v1661_v14 }
 0xabb   :  { %v1624_v62 = vpop.f32.mrf.mxu0 }
 0xabc   :  { %v1663_v0 = vmul.f32 %v1649_v60, %v1624_v62 }
 0xabd   :  { %v2363_v48 = vpop.f32.mrf.mxu0 }
 0xabf   :  { %v1627_v7 = vpop.f32.mrf.mxu0 }
 0xac0   :  { %v1664_v39 = vmul.f32 %v1650_v29, %v1627_v7 }
 0xac1   :  { %v2364_v28 = vpop.f32.mrf.mxu0 }
 0xac2   :  { %v1672_v10 = vpack.c.bf16 %v1664_v39, %v1663_v0  ;;  %v2014_v39 = vld [vmem:[%s3252_s5 + $0x7] ss:$0 sm:$0xff] }
 0xac3   :  { %v1632_v53 = vpop.f32.mrf.mxu0 }
 0xac4   :  { %v1665_v18 = vmul.f32 %v1651_v5, %v1632_v53 }
 0xac5   :  { %v2367_v8 = vpop.f32.mrf.mxu0 }
 0xac7   :  { %v1635_v34 = vpop.f32.mrf.mxu0 }
 0xac8   :  { %v1666_v22 = vmul.f32 %v1652_v13, %v1635_v34 }
 0xac9   :  { %v2368_v33 = vpop.f32.mrf.mxu0 }
 0xaca   :  { %v1673_v47 = vpack.c.bf16 %v1666_v22, %v1665_v18 }
 0xacc   :  { %2370 = vmatpush3.bf16.msra.mxu1 %v1673_v47 }
 0xacd   :  { %2371 = vmatprep.subr.bf16.mxu1 %v2548_v1 }
 0xad0   :  { %2372 = vmatpush3.bf16.msra.mxu1 %v1672_v10 }
 0xad1   :  { %2373 = vmatprep.subr.bf16.mxu1 %v2548_v1 }
 0xad4   :  { %2374 = vmatpush3.bf16.msra.mxu1 %v1671_v19 }
 0xad5   :  { %2375 = vmatprep.subr.bf16.mxu1 %v2548_v1 }
 0xad8   :  { %2376 = vmatpush3.bf16.msra.mxu1 %v1670_v37 }
 0xad9   :  { %2377 = vmatprep.subr.bf16.mxu1 %v2548_v1 }
 0xadc   :  { %2378 = vmatpush3.bf16.msra.mxu1 %v1669_v41 }
 0xadd   :  { %2379 = vmatprep.subr.bf16.mxu1 %v2548_v1 }
 0xae0   :  { %2380 = vmatpush3.bf16.msra.mxu1 %v1668_v40 }
 0xae1   :  { %2381 = vmatprep.subr.bf16.mxu1 %v2548_v1 }
 0xae4   :  { %2382 = vmatpush3.bf16.msra.mxu1 %v1667_v35 }
 0xae5   :  { %2387 = vmatprep.subr.bf16.mxu1 %v2548_v1 }
 0xae7   :  { %2384 = vmatmul.mubr.msk.bf16.vlgmr.msra.gmra.mxu1 %vm902_vm4, %v2977_v12 }
 0xae8   :  { %2391 = vmatprep.mubr.msk.bf16.mxu1 %vm2549_vm0, %v2548_v1  ;;  %2388 = vmatpush3.bf16.msra.mxu1 %v2440_v32 }
 0xae9   :  { %2389 = vmatprep.subr.bf16.mxu1 %v2548_v1 }
 0xaec   :  { %2390 = vmatpush3.bf16.msra.mxu1 %v2441_v9 }
 0xaed   :  { %2395 = vmatprep.subr.bf16.mxu1 %v2548_v1 }
 0xba7   :  { %v1708_v46 = vpop.f32.mrf.mxu1 }
 0xba9   :  { %v2385_v42 = vpop.f32.mrf.mxu1 }
 0xbab   :  { %v1711_v12 = vpop.f32.mrf.mxu1 }
 0xbac   :  { %v1715_v21 = vpack.c.bf16 %v1711_v12, %v1708_v46 }
 0xbad   :  { %v2386_v35 = vpop.f32.mrf.mxu1 }
 0xbae   :  { %2392 = vmatmul.mubr.msk.bf16.vlgmr.msra.gmra.mxu1 %vm108_vm1, %v1715_v21 }
 0xbaf   :  { %2399 = vmatprep.mubr.msk.bf16.mxu1 %vm2549_vm0, %v2548_v1  ;;  %2396 = vmatpush3.bf16.msra.mxu1 %v2442_v15 }
 0xbb0   :  { %2397 = vmatprep.subr.bf16.mxu1 %v2548_v1 }
 0xbb3   :  { %2398 = vmatpush3.bf16.msra.mxu1 %v2443_v38 }
 0xc6e   :  { %v1769_v52 = vpop.f32.mrf.mxu1 }
 0xc6f   :  { %v1770_v57 = vadd.f32 %v2008_v44, %v1769_v52 }
 0xc70   :  { %v2393_v58 = vpop.f32.mrf.mxu1 }
 0xc71   :  { %v1776_v45 = vand.u32 2147483647, %v1770_v57  ;;  %v1790_v53 = vmax.f32 %v1770_v57, 0.0 }
 0xc72   :  { %v1772_v59 = vpop.f32.mrf.mxu1 }
 0xc73   :  { %v1778_v2 = vsub.f32 0.0, %v1776_v45  ;;  %v1773_v56 = vadd.f32 %v2008_v44, %v1772_v59 }
 0xc74   :  { %v2394_v49 = vpop.f32.mrf.mxu1 }
 0xc75   :  { %v1780_v61 = vmul.f32 1.442695, %v1778_v2  ;;  %v1777_v63 = vand.u32 2147483647, %v1773_v56  ;;  %v1791_v13 = vmax.f32 %v1773_v56, 0.0 }
 0xc77   :  { %2516 = vpow2.f32 %v1780_v61  ;;  %v1779_v1 = vsub.f32 0.0, %v1777_v63 }
 0xc79   :  { %v1782_v31 = vmul.f32 1.442695, %v1779_v1 }
 0xc7b   :  { %2518 = vpow2.f32 %v1782_v31 }
 0xc84   :  { %v2517_v25 = vpop.eup %2516 }
 0xc85   :  { %v1784_v55 = vadd.f32 1.0, %v2517_v25 }
 0xc87   :  { %2520 = vlog2.f32 %v1784_v55 }
 0xc88   :  { %v2519_v62 = vpop.eup %2518 }
 0xc89   :  { %v1785_v48 = vadd.f32 1.0, %v2519_v62 }
 0xc8b   :  { %2522 = vlog2.f32 %v1785_v48 }
 0xc94   :  { %v2521_v7 = vpop.eup %2520 }
 0xc95   :  { %v1787_v28 = vmul.f32 0.6931472, %v2521_v7 }
 0xc97   :  { %v1792_v5 = vadd.f32 %v1790_v53, %v1787_v28 }
 0xc98   :  { %v2523_v8 = vpop.eup %2522 }
 0xc99   :  { %v1789_v34 = vmul.f32 0.6931472, %v2523_v8  ;;  %v2012_v22 = vadd.f32 -0.6931472, %v1792_v5 }
 0xc9b   :  { %v1793_v18 = vadd.f32 %v1791_v13, %v1789_v34 }
 0xc9d   :  { %v2013_v29 = vadd.f32 -0.6931472, %v1793_v18 }
 0xc9f   :  { %v1796_v33 = vpack.c.bf16 %v2013_v29, %v2012_v22 }
 0xca1   :  { %2400 = vmatmul.mubr.msk.bf16.vlgmr.msra.gmra.mxu1 %vm108_vm1, %v1796_v33 }
 0xd61   :  { %v1850_v47 = vpop.f32.mrf.mxu1 }
 0xd62   :  { %v1851_v60 = vadd.f32 %v2014_v39, %v1850_v47 }
 0xd63   :  { %v2401_v0 = vpop.f32.mrf.mxu1 }
 0xd64   :  { %v1857_v4 = vadd.f32 %v1851_v60, %v3159_v30 }
 0xd65   :  { %v1853_v6 = vpop.f32.mrf.mxu1 }
 0xd66   :  { %1859 = vst.msk [vmem:[#allocation3] sm:$0xff] %vm108_vm1, %v1857_v4  ;;  %v1854_v10 = vadd.f32 %v2014_v39, %v1853_v6 }
 0xd67   :  { %v2402_v11 = vpop.f32.mrf.mxu1 }
 0xd68   :  { %v1858_v14 = vadd.f32 %v1854_v10, %v3162_v36 }
 0xd6a   :  { %1860 = vst.msk [vmem:[#allocation3 + $0x8] sm:$0xff] %vm108_vm1, %v1858_v14 }
 0xd6b   :  { %2537 = shalt.err (!%p2534_p4)
}
 0xd6c   :  { %s2553_s5 = smov 128   ;;  %s2554_s13 = smov 8  }
 0xd6d   :  { %1872 = dma.vmem_to_hbm [thread:$0]  %s1867_s0, 256, %s3253_s6, [#allocation4], %s2553_s5, %s2553_s5, %s2554_s13  }
 0xd6e   :  { %2546 = dma.done.wait [#allocation4], 256  }
 0xd6f   :  { %2547 = vsyncadd [#allocation4], 4294967040 }
 0xd70   :  { %1876 = vsyncpa [#allocation4], 1 }

</bundles_post_ra>
